<compile_context>
chip_gen: v5e
topology: v5e:2x2
jax: 0.10.0
libtpu: 0.0.40
codegen_flags: <defaults>
</compile_context>

<pallas_src>
import functools

import numpy as np
import jax
import jax.numpy as jnp
from jax import lax
from jax.experimental import pallas as pl
from jax.experimental.pallas import tpu as pltpu


# ---------------------------------------------------------------------------
# Generation-aware configuration
# ---------------------------------------------------------------------------
def _round_up(v, m):
    return -(-v // m) * m


@functools.lru_cache()
def _tpu_cfg():
    vmem = 64 * 1024 * 1024  # conservative default (v7x has 64 MiB per TC)
    try:
        info = pltpu.get_tpu_info()
        for attr in ("vmem_capacity_bytes", "vmem_bytes", "vmem_size_bytes"):
            v = getattr(info, attr, None)
            if v:
                vmem = int(v)
                break
    except Exception:
        pass
    # ~41 MiB on v7x (64 MiB physical), ~83 MiB on v5e/v6e (128 MiB physical).
    vmem_limit = min(int(vmem * 0.65), 96 * 1024 * 1024)
    return {
        "vmem_limit": vmem_limit,
        "fused_budget": int(vmem_limit * 0.6),
        "tm_max": 1024 if vmem >= 96 * 1024 * 1024 else 512,
    }


def _apply_activation(x, activ):
    if activ == "relu":
        return jnp.maximum(x, 0.0)
    if activ == "lrelu":
        return jnp.where(x >= 0.0, x, 0.2 * x)
    if activ == "tanh":
        return jnp.tanh(x)
    if activ == "silu":
        return x * jax.nn.sigmoid(x)
    if activ == "selu":
        return jax.nn.selu(x)
    if activ == "none":
        return x
    # TODO(synk): 'prelu' needs a learnable slope parameter; not implemented.
    raise NotImplementedError(f"activation '{activ}' not supported in kernel")


# ---------------------------------------------------------------------------
# Fused conv kernels: 4x4 / stride-2 conv as 4 in-kernel tap dots (+ optional
# fused 1x1 head), bias + activation in the f32 accumulator.
# ---------------------------------------------------------------------------
def _conv4x4s2_kernel(y_ref, w_ref, b_ref, o_ref, *, mg, ow_p1, tn, activ):
    # y_ref: (1, Mz_pad, 4C) bf16 | w_ref: (2, 2, 4C, tn) bf16 | b_ref: (1, tn) f32
    # o_ref: (1, mg, tn)
    acc = jnp.zeros((mg, tn), jnp.float32)
    for a in range(2):
        for bq in range(2):
            s = a * ow_p1 + bq
            acc = acc + jnp.dot(y_ref[0, s:s + mg, :], w_ref[a, bq],
                                preferred_element_type=jnp.float32)
    acc = _apply_activation(acc + b_ref[...], activ)
    o_ref[0] = acc.astype(o_ref.dtype)


def _conv4x4s2_head_kernel(y_ref, w_ref, b_ref, wh_ref, bh_ref, o_ref, *,
                           mg, ow_p1, tn, activ):
    # Same as above, plus a fused 1x1 head: wh_ref (Cout, d) bf16, bh_ref (1, d) f32.
    acc = jnp.zeros((mg, tn), jnp.float32)
    for a in range(2):
        for bq in range(2):
            s = a * ow_p1 + bq
            acc = acc + jnp.dot(y_ref[0, s:s + mg, :], w_ref[a, bq],
                                preferred_element_type=jnp.float32)
    acc = _apply_activation(acc + b_ref[...], activ)
    h = jnp.dot(acc.astype(wh_ref.dtype), wh_ref[...],
                preferred_element_type=jnp.float32)
    o_ref[0] = (h + bh_ref[...]).astype(o_ref.dtype)


def _pick_tile_n(cout, batch):
    # Keep N lane-dense; tile Cout only when large, and give the grid a second
    # "parallel" point when batch alone cannot feed both v7x TensorCores.
    if cout > 256 and cout % 256 == 0:
        return 256
    if batch < 2 and cout > 128 and cout % 128 == 0:
        return 128
    return cout
    # TODO(synk): layers with Cout < 128 (first conv / tiny heads) still store
    # lane-sparse tiles; acceptable at these sizes, revisit for production dims.


def _fused_fits(B, H, W, C, cout, head, out_dtype, cfg):
    OH, OW = H // 2, W // 2
    mz_pad = _round_up((OH + 1) * (OW + 1) + 1, 8)
    mg = OH * (OW + 1)
    tn = cout if head is not None else _pick_tile_n(cout, B)
    ncols = head["w"].shape[-1] if head is not None else tn
    in_b = mz_pad * 4 * C * 2
    w_b = 16 * C * tn * 2 + (cout * ncols * 2 if head is not None else 0)
    out_b = mg * ncols * jnp.dtype(out_dtype).itemsize
    acc_b = mg * tn * 4 + mg * 4 * C * 2  # f32 accumulator + one shifted tap copy
    need = 2 * (in_b + out_b) + 2 * w_b + acc_b
    return need <= cfg["fused_budget"]


def _conv4x4s2_fused(x, conv, *, activ, pad_type, out_dtype, head, cfg):
    B, H, W, C = x.shape
    w_tap, bias = conv["w_tap"], conv["b"]
    Cout = w_tap.shape[-1]
    OH, OW = H // 2, W // 2
    ow_p1 = OW + 1
    mg = OH * ow_p1                  # output rows incl. one garbage column per row
    mz = (OH + 1) * ow_p1
    mz_pad = _round_up(mz + 1, 8)    # +1: tap (a=1,b=1) reads one row past mz

    x = x.astype(jnp.bfloat16)
    mode = {"reflect": "reflect", "replicate": "edge", "zero": "constant"}[pad_type]
    xp = jnp.pad(x, ((0, 0), (1, 1), (1, 1), (0, 0)), mode=mode)
    # space-to-depth (2x2): y2[b,i,j,(p*2+q)*C+c] = xp[b, 2i+p, 2j+q, c]
    y2 = (xp.reshape(B, OH + 1, 2, ow_p1, 2, C)
            .transpose(0, 1, 3, 2, 4, 5)
            .reshape(B, OH + 1, ow_p1, 4 * C))
    y2f = jnp.pad(y2.reshape(B, mz, 4 * C), ((0, 0), (0, mz_pad - mz), (0, 0)))

    common = dict(mg=mg, ow_p1=ow_p1, activ=activ)
    if head is None:
        tn = _pick_tile_n(Cout, B)
        kernel = functools.partial(_conv4x4s2_kernel, tn=tn, **common)
        grid = (B, Cout // tn)
        flops = 2 * B * mg * 4 * C * Cout * 4
        bytes_acc = int(B * (Cout // tn) * mz_pad * 4 * C * 2 + 16 * C * Cout * 2
                        + B * mg * Cout * jnp.dtype(out_dtype).itemsize)
        out = pl.pallas_call(
            kernel,
            out_shape=jax.ShapeDtypeStruct((B, mg, Cout), out_dtype),
            grid=grid,
            in_specs=[
                pl.BlockSpec((1, mz_pad, 4 * C), lambda i, j: (i, 0, 0)),
                pl.BlockSpec((2, 2, 4 * C, tn), lambda i, j: (0, 0, 0, j)),
                pl.BlockSpec((1, tn), lambda i, j: (0, j)),
            ],
            out_specs=pl.BlockSpec((1, mg, tn), lambda i, j: (i, 0, j)),
            compiler_params=pltpu.CompilerParams(
                dimension_semantics=("parallel", "parallel"),
                vmem_limit_bytes=cfg["vmem_limit"]),
            cost_estimate=pl.CostEstimate(flops=flops, transcendentals=0,
                                          bytes_accessed=bytes_acc),
        )(y2f, w_tap, bias)
        out_c = Cout
    else:
        wh, bh = head["w"], head["b"]
        d_out = wh.shape[-1]
        kernel = functools.partial(_conv4x4s2_head_kernel, tn=Cout, **common)
        flops = 2 * B * mg * (4 * C * Cout * 4 + Cout * d_out)
        bytes_acc = int(B * mz_pad * 4 * C * 2 + (16 * C * Cout + Cout * d_out) * 2
                        + B * mg * d_out * jnp.dtype(out_dtype).itemsize)
        out = pl.pallas_call(
            kernel,
            out_shape=jax.ShapeDtypeStruct((B, mg, d_out), out_dtype),
            grid=(B,),
            in_specs=[
                pl.BlockSpec((1, mz_pad, 4 * C), lambda i: (i, 0, 0)),
                pl.BlockSpec((2, 2, 4 * C, Cout), lambda i: (0, 0, 0, 0)),
                pl.BlockSpec((1, Cout), lambda i: (0, 0)),
                pl.BlockSpec((Cout, d_out), lambda i: (0, 0)),
                pl.BlockSpec((1, d_out), lambda i: (0, 0)),
            ],
            out_specs=pl.BlockSpec((1, mg, d_out), lambda i: (i, 0, 0)),
            compiler_params=pltpu.CompilerParams(
                dimension_semantics=("parallel",),
                vmem_limit_bytes=cfg["vmem_limit"]),
            cost_estimate=pl.CostEstimate(flops=flops, transcendentals=0,
                                          bytes_accessed=bytes_acc),
        )(y2f, w_tap, bias, wh, bh)
        out_c = d_out

    # drop the per-row garbage column introduced by the flattened tap addressing
    return out.reshape(B, OH, ow_p1, out_c)[:, :, :OW, :]


# ---------------------------------------------------------------------------
# Fallback path: tiled GEMM + fused bias/activation (materialized im2col)
# ---------------------------------------------------------------------------
def _matmul_bias_act_kernel(x_ref, w_ref, b_ref, o_ref, *, activ):
    acc = jnp.dot(x_ref[...], w_ref[...], preferred_element_type=jnp.float32)
    acc = _apply_activation(acc + b_ref[...], activ)
    o_ref[...] = acc.astype(o_ref.dtype)


def _pick_tile_m(m, tm_max):
    # Multiples of 16 only (bf16 sublane packing). Prefer exact divisors of M;
    # prefer >=2 tiles so both v7x TensorCores get work.
    best = None
    for t in (2048, 1024, 512, 256, 128, 64, 32, 16):
        if t <= tm_max and m % t == 0:
            if m // t >= 2:
                return t
            if best is None:
                best = t
    if best is not None:
        return best
    return max(16, min(tm_max, _round_up(m, 16)))


def _fused_gemm_bias_act(x_cols, w_mat, bias, activ, *, out_dtype, cfg):
    M, K = x_cols.shape
    Cout = w_mat.shape[1]
    tm = _pick_tile_m(M, cfg["tm_max"])
    Mp = _round_up(M, tm)
    x = x_cols.astype(jnp.bfloat16)
    if Mp != M:
        x = jnp.pad(x, ((0, Mp - M), (0, 0)))
    tn = 256 if (Cout > 256 and Cout % 256 == 0) else Cout
    grid = (Mp // tm, Cout // tn)
    kernel = functools.partial(_matmul_bias_act_kernel, activ=activ)
    out = pl.pallas_call(
        kernel,
        out_shape=jax.ShapeDtypeStruct((Mp, Cout), out_dtype),
        grid=grid,
        in_specs=[
            pl.BlockSpec((tm, K), lambda i, j: (i, 0)),
            pl.BlockSpec((K, tn), lambda i, j: (0, j)),
            pl.BlockSpec((1, tn), lambda i, j: (0, j)),
        ],
        out_specs=pl.BlockSpec((tm, tn), lambda i, j: (i, j)),
        compiler_params=pltpu.CompilerParams(
            dimension_semantics=("parallel", "parallel"),
            vmem_limit_bytes=cfg["vmem_limit"]),
        cost_estimate=pl.CostEstimate(
            flops=2 * Mp * K * Cout, transcendentals=0,
            bytes_accessed=int((Mp * K + K * Cout) * 2
                               + Mp * Cout * jnp.dtype(out_dtype).itemsize)),
    )(x, w_mat.astype(jnp.bfloat16), bias)
    return out[:M] if Mp != M else out


def _conv_im2col(x, w_mat, bias, *, kh, kw, stride, padding, pad_type, activ,
                 out_dtype, cfg):
    B, H, W, C = x.shape
    x = x.astype(jnp.bfloat16)
    if padding:
        mode = {"reflect": "reflect", "replicate": "edge", "zero": "constant"}[pad_type]
        x = jnp.pad(x, ((0, 0), (padding, padding), (padding, padding), (0, 0)), mode=mode)
    Hp, Wp = x.shape[1], x.shape[2]
    OH = (Hp - kh) // stride + 1
    OW = (Wp - kw) // stride + 1
    M = B * OH * OW
    if kh == 1 and kw == 1 and stride == 1:
        cols = x.reshape(M, C)
    else:
        taps = [x[:, i:i + (OH - 1) * stride + 1:stride,
                  j:j + (OW - 1) * stride + 1:stride, :]
                for i in range(kh) for j in range(kw)]
        cols = jnp.concatenate(taps, axis=-1).reshape(M, kh * kw * C)
    out = _fused_gemm_bias_act(cols, w_mat, bias, activ, out_dtype=out_dtype, cfg=cfg)
    return out.reshape(B, OH, OW, -1)


# ---------------------------------------------------------------------------
# Conv2dBlock (norm='none') and downsample
# ---------------------------------------------------------------------------
def conv4x4s2_block(x, conv, *, activ, pad_type, out_dtype, head, cfg):
    """One Conv2dBlock(4,2,1) (+ optional fused 1x1 head). x: (B,H,W,C)."""
    B, H, W, C = x.shape
    Cout = conv["w_tap"].shape[-1]
    use_fused = (H % 2 == 0 and W % 2 == 0 and H >= 2 and W >= 2
                 and _fused_fits(B, H, W, C, Cout, head, out_dtype, cfg))
    if use_fused:
        return _conv4x4s2_fused(x, conv, activ=activ, pad_type=pad_type,
                                out_dtype=out_dtype, head=head, cfg=cfg)
    # Fallback: materialized-im2col GEMM (+ separate 1x1 head GEMM if present).
    h = _conv_im2col(x, conv["w_mat"], conv["b"], kh=4, kw=4, stride=2, padding=1,
                     pad_type=pad_type, activ=activ,
                     out_dtype=(jnp.bfloat16 if head is not None else out_dtype),
                     cfg=cfg)
    if head is not None:
        Bh, OH, OW, CC = h.shape
        o = _fused_gemm_bias_act(h.reshape(Bh * OH * OW, CC), head["w"], head["b"],
                                 activ="none", out_dtype=out_dtype, cfg=cfg)
        h = o.reshape(Bh, OH, OW, -1)
    return h


def _avg_pool_3x3_s2_p1_nhwc(x):
    # AvgPool2d(3, stride=2, padding=1, count_include_pad=False).
    B, H, W, C = x.shape
    dims, strides = (1, 3, 3, 1), (1, 2, 2, 1)
    pads = ((0, 0), (1, 1), (1, 1), (0, 0))
    s = lax.reduce_window(x, 0.0, lax.add, dims, strides, pads)
    oh = np.arange(s.shape[1])
    ow = np.arange(s.shape[2])
    rows = np.minimum(2 * oh + 2, H) - np.maximum(2 * oh - 1, 0)
    cols = np.minimum(2 * ow + 2, W) - np.maximum(2 * ow - 1, 0)
    inv = (1.0 / (rows[:, None] * cols[None, :])).astype(np.float32)
    return s * jnp.asarray(inv)[None, :, :, None]


# ---------------------------------------------------------------------------
# MSResNet: parameters + forward
# ---------------------------------------------------------------------------
def init_msresnet_params(key, *, input_dim, dim, n_layer, num_scales, out_dim):
    """PyTorch-like params: OIHW f32 weights + f32 biases (nn.Conv2d default init)."""
    def conv_init(k, cout, cin, kh, kw):
        kw_, kb_ = jax.random.split(k)
        fan_in = cin * kh * kw
        bound = 1.0 / (fan_in ** 0.5)
        w = jax.random.uniform(kw_, (cout, cin, kh, kw), jnp.float32, -bound, bound)
        b = jax.random.uniform(kb_, (cout,), jnp.float32, -bound, bound)
        return w, b

    params = []
    skeys = jax.random.split(key, num_scales)
    for i in range(num_scales):
        d_out = out_dim // 2 ** (num_scales - i - 1) if out_dim > 1 else 1
        lkeys = jax.random.split(skeys[i], n_layer + 1)
        convs = []
        cin, cur = input_dim, dim
        convs.append(conv_init(lkeys[0], cur, cin, 4, 4))
        for j in range(n_layer - 1):
            convs.append(conv_init(lkeys[j + 1], cur * 2, cur, 4, 4))
            cur *= 2
        final = conv_init(lkeys[n_layer], d_out, cur, 1, 1)
        params.append({"convs": convs, "final": final})
    return params


def prepare_msresnet_params(params):
    """Pack weights ONCE (hoisted out of the forward): tap-major bf16 weights for
    the fused conv kernel, im2col bf16 weights for the fallback, (1,Cout) f32 bias."""
    prepped = []
    for scale in params:
        convs = []
        for (w, b) in scale["convs"]:
            cout, cin, kh, kw = w.shape
            w_tap = (w.reshape(cout, cin, 2, 2, 2, 2)
                      .transpose(2, 4, 3, 5, 1, 0)
                      .reshape(2, 2, 4 * cin, cout).astype(jnp.bfloat16))
            w_mat = (jnp.transpose(w, (2, 3, 1, 0))
                      .reshape(kh * kw * cin, cout).astype(jnp.bfloat16))
            convs.append({"w_tap": w_tap, "w_mat": w_mat,
                          "b": b.reshape(1, cout).astype(jnp.float32)})
        wf, bf = scale["final"]
        d, cin = wf.shape[0], wf.shape[1]
        head = {"w": wf.reshape(d, cin).T.astype(jnp.bfloat16),
                "b": bf.reshape(1, d).astype(jnp.float32)}
        prepped.append({"convs": convs, "head": head})
    return prepped


def msresnet_forward(prepped, x_nchw, *, activ="lrelu", pad_type="reflect"):
    """MSResNet.forward: list with one NCHW output per scale."""
    cfg = _tpu_cfg()
    x = jnp.transpose(x_nchw, (0, 2, 3, 1)).astype(jnp.float32)  # NHWC inside
    outputs = []
    for i, scale in enumerate(prepped):
        h = x
        convs = scale["convs"]
        for li, conv in enumerate(convs):
            last = li == len(convs) - 1
            h = conv4x4s2_block(
                h, conv, activ=activ, pad_type=pad_type,
                out_dtype=jnp.float32 if last else jnp.bfloat16,
                head=scale["head"] if last else None, cfg=cfg)
        outputs.append(jnp.transpose(h, (0, 3, 1, 2)))
        if i + 1 < len(prepped):
            x = _avg_pool_3x3_s2_p1_nhwc(x)
    return outputs


# ---------------------------------------------------------------------------
# Pure-XLA f32 reference (mirrors the PyTorch module semantics)
# ---------------------------------------------------------------------------
def _ref_conv_block(x, w, b, *, stride, padding, pad_type, activ):
    if padding:
        mode = {"reflect": "reflect", "replicate": "edge", "zero": "constant"}[pad_type]
        x = jnp.pad(x, ((0, 0), (0, 0), (padding, padding), (padding, padding)), mode=mode)
    y = lax.conv_general_dilated(x, w, (stride, stride), "VALID",
                                 dimension_numbers=("NCHW", "OIHW", "NCHW"))
    y = y + b.reshape(1, -1, 1, 1)
    if activ == "lrelu":
        y = jnp.where(y >= 0, y, 0.2 * y)
    elif activ == "relu":
        y = jnp.maximum(y, 0.0)
    return y


def _ref_avg_pool(x):
    dims, strides = (1, 1, 3, 3), (1, 1, 2, 2)
    pads = ((0, 0), (0, 0), (1, 1), (1, 1))
    s = lax.reduce_window(x, 0.0, lax.add, dims, strides, pads)
    cnt = lax.reduce_window(jnp.ones_like(x[:, :1]), 0.0, lax.add, dims, strides, pads)
    return s / cnt


def _ref_msresnet(params, x, *, activ="lrelu", pad_type="reflect"):
    outs = []
    for i, scale in enumerate(params):
        h = x
        for (w, b) in scale["convs"]:
            h = _ref_conv_block(h, w, b, stride=2, padding=1, pad_type=pad_type, activ=activ)
        wf, bf = scale["final"]
        h = _ref_conv_block(h, wf, bf, stride=1, padding=0, pad_type="zero", activ="none")
        outs.append(h)
        if i + 1 < len(params):
            x = _ref_avg_pool(x)
    return outs


if __name__ == "__main__":
    key = jax.random.PRNGKey(0)
    kx, kp = jax.random.split(key)

    # Small config consistent with MSResNet (norm='none', activ='lrelu', reflect pad):
    B, Cin, H, W = 2, 4, 16, 16
    net = dict(input_dim=Cin, dim=8, n_layer=2, num_scales=3, out_dim=8)

    x = jax.random.normal(kx, (B, Cin, H, W), jnp.float32)
    params = init_msresnet_params(kp, **net)
    prepped = prepare_msresnet_params(params)

    fwd = jax.jit(functools.partial(msresnet_forward, activ="lrelu", pad_type="reflect"))
    outs = jax.block_until_ready(fwd(prepped, x))

    refs = _ref_msresnet(params, x, activ="lrelu", pad_type="reflect")
    assert len(outs) == net["num_scales"]
    for o, r in zip(outs, refs):
        assert o.shape == r.shape, (o.shape, r.shape)
        # bf16 operands / bf16 intermediate activations, f32 accumulation
        err = float(jnp.max(jnp.abs(o.astype(jnp.float32) - r)))
        assert jnp.allclose(o, r, atol=5e-2, rtol=5e-2), err
    print("KERNEL_OK")
</pallas_src>

<mosaic_0001>
module attributes {stable_mosaic.version = 11 : i64} {
  func.func @_conv4x4s2_kernel(%arg0: i32, %arg1: i32, %arg2: memref<1x88x16xbf16, #tpu.memory_space<vmem>>, %arg3: memref<2x2x16x8xbf16, #tpu.memory_space<vmem>>, %arg4: memref<1x8xf32, #tpu.memory_space<vmem>>, %arg5: memref<1x72x8xbf16, #tpu.memory_space<vmem>>) attributes {dimension_semantics = [#tpu.dimension_semantics<parallel>, #tpu.dimension_semantics<parallel>], iteration_bounds = array<i64: 2, 1>, scalar_prefetch = 0 : i64, scratch_operands = 0 : i64, tpu.core_type = #tpu.core_type<tc>, window_params = [{transform_indices = @transform_0, window_bounds = array<i64: 1, 88, 16>}, {transform_indices = @transform_1, window_bounds = array<i64: 2, 2, 16, 8>}, {transform_indices = @transform_2, window_bounds = array<i64: 1, 8>}, {transform_indices = @transform_3, window_bounds = array<i64: 1, 72, 8>}]} {
    %cst = arith.constant 0.000000e+00 : f32
    %0 = vector.broadcast %cst : f32 to vector<72x8xf32>
    %c0 = arith.constant 0 : index
    %c0_0 = arith.constant 0 : index
    %c0_1 = arith.constant 0 : index
    %1 = vector.load %arg2[%c0, %c0_0, %c0_1] : memref<1x88x16xbf16, #tpu.memory_space<vmem>>, vector<1x72x16xbf16>
    %2 = vector.shape_cast %1 : vector<1x72x16xbf16> to vector<72x16xbf16>
    %c0_2 = arith.constant 0 : index
    %c0_3 = arith.constant 0 : index
    %c0_4 = arith.constant 0 : index
    %c0_5 = arith.constant 0 : index
    %3 = vector.load %arg3[%c0_2, %c0_3, %c0_4, %c0_5] : memref<2x2x16x8xbf16, #tpu.memory_space<vmem>>, vector<1x1x16x8xbf16>
    %4 = vector.shape_cast %3 : vector<1x1x16x8xbf16> to vector<16x8xbf16>
    %cst_6 = arith.constant dense<0.000000e+00> : vector<72x8xf32>
    %5 = tpu.matmul %2, %4, %cst_6 {dimension_numbers = #tpu.dot_dimension_numbers<[1], [0], [0], [1], [0, 0, 1, 1], [], []>} : vector<72x16xbf16>, vector<16x8xbf16>, vector<72x8xf32> -> vector<72x8xf32>
    %6 = arith.addf %0, %5 : vector<72x8xf32>
    %c0_7 = arith.constant 0 : index
    %c1 = arith.constant 1 : index
    %c0_8 = arith.constant 0 : index
    %7 = vector.load %arg2[%c0_7, %c1, %c0_8] : memref<1x88x16xbf16, #tpu.memory_space<vmem>>, vector<1x72x16xbf16>
    %8 = vector.shape_cast %7 : vector<1x72x16xbf16> to vector<72x16xbf16>
    %c0_9 = arith.constant 0 : index
    %c1_10 = arith.constant 1 : index
    %c0_11 = arith.constant 0 : index
    %c0_12 = arith.constant 0 : index
    %9 = vector.load %arg3[%c0_9, %c1_10, %c0_11, %c0_12] : memref<2x2x16x8xbf16, #tpu.memory_space<vmem>>, vector<1x1x16x8xbf16>
    %10 = vector.shape_cast %9 : vector<1x1x16x8xbf16> to vector<16x8xbf16>
    %cst_13 = arith.constant dense<0.000000e+00> : vector<72x8xf32>
    %11 = tpu.matmul %8, %10, %cst_13 {dimension_numbers = #tpu.dot_dimension_numbers<[1], [0], [0], [1], [0, 0, 1, 1], [], []>} : vector<72x16xbf16>, vector<16x8xbf16>, vector<72x8xf32> -> vector<72x8xf32>
    %12 = arith.addf %6, %11 : vector<72x8xf32>
    %c0_14 = arith.constant 0 : index
    %c9 = arith.constant 9 : index
    %c0_15 = arith.constant 0 : index
    %13 = vector.load %arg2[%c0_14, %c9, %c0_15] : memref<1x88x16xbf16, #tpu.memory_space<vmem>>, vector<1x72x16xbf16>
    %14 = vector.shape_cast %13 : vector<1x72x16xbf16> to vector<72x16xbf16>
    %c1_16 = arith.constant 1 : index
    %c0_17 = arith.constant 0 : index
    %c0_18 = arith.constant 0 : index
    %c0_19 = arith.constant 0 : index
    %15 = vector.load %arg3[%c1_16, %c0_17, %c0_18, %c0_19] : memref<2x2x16x8xbf16, #tpu.memory_space<vmem>>, vector<1x1x16x8xbf16>
    %16 = vector.shape_cast %15 : vector<1x1x16x8xbf16> to vector<16x8xbf16>
    %cst_20 = arith.constant dense<0.000000e+00> : vector<72x8xf32>
    %17 = tpu.matmul %14, %16, %cst_20 {dimension_numbers = #tpu.dot_dimension_numbers<[1], [0], [0], [1], [0, 0, 1, 1], [], []>} : vector<72x16xbf16>, vector<16x8xbf16>, vector<72x8xf32> -> vector<72x8xf32>
    %18 = arith.addf %12, %17 : vector<72x8xf32>
    %c0_21 = arith.constant 0 : index
    %c10 = arith.constant 10 : index
    %c0_22 = arith.constant 0 : index
    %19 = vector.load %arg2[%c0_21, %c10, %c0_22] : memref<1x88x16xbf16, #tpu.memory_space<vmem>>, vector<1x72x16xbf16>
    %20 = vector.shape_cast %19 : vector<1x72x16xbf16> to vector<72x16xbf16>
    %c1_23 = arith.constant 1 : index
    %c1_24 = arith.constant 1 : index
    %c0_25 = arith.constant 0 : index
    %c0_26 = arith.constant 0 : index
    %21 = vector.load %arg3[%c1_23, %c1_24, %c0_25, %c0_26] : memref<2x2x16x8xbf16, #tpu.memory_space<vmem>>, vector<1x1x16x8xbf16>
    %22 = vector.shape_cast %21 : vector<1x1x16x8xbf16> to vector<16x8xbf16>
    %cst_27 = arith.constant dense<0.000000e+00> : vector<72x8xf32>
    %23 = tpu.matmul %20, %22, %cst_27 {dimension_numbers = #tpu.dot_dimension_numbers<[1], [0], [0], [1], [0, 0, 1, 1], [], []>} : vector<72x16xbf16>, vector<16x8xbf16>, vector<72x8xf32> -> vector<72x8xf32>
    %24 = arith.addf %18, %23 : vector<72x8xf32>
    %c0_28 = arith.constant 0 : index
    %c0_29 = arith.constant 0 : index
    %25 = vector.load %arg4[%c0_28, %c0_29] : memref<1x8xf32, #tpu.memory_space<vmem>>, vector<1x8xf32>
    %26 = vector.broadcast %25 : vector<1x8xf32> to vector<72x8xf32>
    %27 = arith.addf %24, %26 : vector<72x8xf32>
    %cst_30 = arith.constant 0.000000e+00 : f32
    %28 = vector.broadcast %cst_30 : f32 to vector<72x8xf32>
    %29 = arith.cmpf oge, %27, %28 : vector<72x8xf32>
    %cst_31 = arith.constant 2.000000e-01 : f32
    %30 = vector.broadcast %cst_31 : f32 to vector<72x8xf32>
    %31 = arith.mulf %30, %27 : vector<72x8xf32>
    %32 = arith.select %29, %27, %31 : vector<72x8xi1>, vector<72x8xf32>
    %33 = arith.truncf %32 : vector<72x8xf32> to vector<72x8xbf16>
    %c0_32 = arith.constant 0 : index
    %c0_33 = arith.constant 0 : index
    %c0_34 = arith.constant 0 : index
    %34 = vector.load %arg5[%c0_32, %c0_33, %c0_34] : memref<1x72x8xbf16, #tpu.memory_space<vmem>>, vector<1x72x8xbf16>
    %35 = vector.shape_cast %34 : vector<1x72x8xbf16> to vector<72x8xbf16>
    %36 = vector.shape_cast %33 : vector<72x8xbf16> to vector<1x72x8xbf16>
    tpu.vector_store %arg5[%c0_32, %c0_33, %c0_34], %36 {strides = array<i32>} : memref<1x72x8xbf16, #tpu.memory_space<vmem>>, vector<1x72x8xbf16>,
    return
  }
  func.func @transform_0(%arg0: i32, %arg1: i32) -> (i32, i32, i32) {
    %c0_i32 = arith.constant 0 : i32
    %c0_i32_0 = arith.constant 0 : i32
    %c0_i32_1 = arith.constant 0 : i32
    return %arg0, %c0_i32, %c0_i32_0 : i32, i32, i32
  }
  func.func @transform_1(%arg0: i32, %arg1: i32) -> (i32, i32, i32, i32) {
    %c0_i32 = arith.constant 0 : i32
    %c0_i32_0 = arith.constant 0 : i32
    %c0_i32_1 = arith.constant 0 : i32
    %c0_i32_2 = arith.constant 0 : i32
    return %c0_i32, %c0_i32_0, %c0_i32_1, %arg1 : i32, i32, i32, i32
  }
  func.func @transform_2(%arg0: i32, %arg1: i32) -> (i32, i32) {
    %c0_i32 = arith.constant 0 : i32
    %c0_i32_0 = arith.constant 0 : i32
    return %c0_i32, %arg1 : i32, i32
  }
  func.func @transform_3(%arg0: i32, %arg1: i32) -> (i32, i32, i32) {
    %c0_i32 = arith.constant 0 : i32
    %c0_i32_0 = arith.constant 0 : i32
    return %arg0, %c0_i32, %arg1 : i32, i32, i32
  }
}

module attributes {stable_mosaic.version = 11 : i64} {
  func.func @_conv4x4s2_head_kernel(%arg0: i32, %arg1: memref<1x32x32xbf16, #tpu.memory_space<vmem>>, %arg2: memref<2x2x32x16xbf16, #tpu.memory_space<vmem>>, %arg3: memref<1x16xf32, #tpu.memory_space<vmem>>, %arg4: memref<16x2xbf16, #tpu.memory_space<vmem>>, %arg5: memref<1x2xf32, #tpu.memory_space<vmem>>, %arg6: memref<1x20x2xf32, #tpu.memory_space<vmem>>) attributes {dimension_semantics = [#tpu.dimension_semantics<parallel>], iteration_bounds = array<i64: 2>, scalar_prefetch = 0 : i64, scratch_operands = 0 : i64, tpu.core_type = #tpu.core_type<tc>, window_params = [{transform_indices = @transform_0, window_bounds = array<i64: 1, 32, 32>}, {pipeline_mode = #tpu.pipeline_mode<synchronous>, transform_indices = @transform_1, window_bounds = array<i64: 2, 2, 32, 16>}, {pipeline_mode = #tpu.pipeline_mode<synchronous>, transform_indices = @transform_2, window_bounds = array<i64: 1, 16>}, {pipeline_mode = #tpu.pipeline_mode<synchronous>, transform_indices = @transform_3, window_bounds = array<i64: 16, 2>}, {pipeline_mode = #tpu.pipeline_mode<synchronous>, transform_indices = @transform_4, window_bounds = array<i64: 1, 2>}, {transform_indices = @transform_5, window_bounds = array<i64: 1, 20, 2>}]} {
    %cst = arith.constant 0.000000e+00 : f32
    %0 = vector.broadcast %cst : f32 to vector<20x16xf32>
    %c0 = arith.constant 0 : index
    %c0_0 = arith.constant 0 : index
    %c0_1 = arith.constant 0 : index
    %1 = vector.load %arg1[%c0, %c0_0, %c0_1] : memref<1x32x32xbf16, #tpu.memory_space<vmem>>, vector<1x20x32xbf16>
    %2 = vector.shape_cast %1 : vector<1x20x32xbf16> to vector<20x32xbf16>
    %c0_2 = arith.constant 0 : index
    %c0_3 = arith.constant 0 : index
    %c0_4 = arith.constant 0 : index
    %c0_5 = arith.constant 0 : index
    %3 = vector.load %arg2[%c0_2, %c0_3, %c0_4, %c0_5] : memref<2x2x32x16xbf16, #tpu.memory_space<vmem>>, vector<1x1x32x16xbf16>
    %4 = vector.shape_cast %3 : vector<1x1x32x16xbf16> to vector<32x16xbf16>
    %cst_6 = arith.constant dense<0.000000e+00> : vector<20x16xf32>
    %5 = tpu.matmul %2, %4, %cst_6 {dimension_numbers = #tpu.dot_dimension_numbers<[1], [0], [0], [1], [0, 0, 1, 1], [], []>} : vector<20x32xbf16>, vector<32x16xbf16>, vector<20x16xf32> -> vector<20x16xf32>
    %6 = arith.addf %0, %5 : vector<20x16xf32>
    %c0_7 = arith.constant 0 : index
    %c1 = arith.constant 1 : index
    %c0_8 = arith.constant 0 : index
    %7 = vector.load %arg1[%c0_7, %c1, %c0_8] : memref<1x32x32xbf16, #tpu.memory_space<vmem>>, vector<1x20x32xbf16>
    %8 = vector.shape_cast %7 : vector<1x20x32xbf16> to vector<20x32xbf16>
    %c0_9 = arith.constant 0 : index
    %c1_10 = arith.constant 1 : index
    %c0_11 = arith.constant 0 : index
    %c0_12 = arith.constant 0 : index
    %9 = vector.load %arg2[%c0_9, %c1_10, %c0_11, %c0_12] : memref<2x2x32x16xbf16, #tpu.memory_space<vmem>>, vector<1x1x32x16xbf16>
    %10 = vector.shape_cast %9 : vector<1x1x32x16xbf16> to vector<32x16xbf16>
    %cst_13 = arith.constant dense<0.000000e+00> : vector<20x16xf32>
    %11 = tpu.matmul %8, %10, %cst_13 {dimension_numbers = #tpu.dot_dimension_numbers<[1], [0], [0], [1], [0, 0, 1, 1], [], []>} : vector<20x32xbf16>, vector<32x16xbf16>, vector<20x16xf32> -> vector<20x16xf32>
    %12 = arith.addf %6, %11 : vector<20x16xf32>
    %c0_14 = arith.constant 0 : index
    %c5 = arith.constant 5 : index
    %c0_15 = arith.constant 0 : index
    %13 = vector.load %arg1[%c0_14, %c5, %c0_15] : memref<1x32x32xbf16, #tpu.memory_space<vmem>>, vector<1x20x32xbf16>
    %14 = vector.shape_cast %13 : vector<1x20x32xbf16> to vector<20x32xbf16>
    %c1_16 = arith.constant 1 : index
    %c0_17 = arith.constant 0 : index
    %c0_18 = arith.constant 0 : index
    %c0_19 = arith.constant 0 : index
    %15 = vector.load %arg2[%c1_16, %c0_17, %c0_18, %c0_19] : memref<2x2x32x16xbf16, #tpu.memory_space<vmem>>, vector<1x1x32x16xbf16>
    %16 = vector.shape_cast %15 : vector<1x1x32x16xbf16> to vector<32x16xbf16>
    %cst_20 = arith.constant dense<0.000000e+00> : vector<20x16xf32>
    %17 = tpu.matmul %14, %16, %cst_20 {dimension_numbers = #tpu.dot_dimension_numbers<[1], [0], [0], [1], [0, 0, 1, 1], [], []>} : vector<20x32xbf16>, vector<32x16xbf16>, vector<20x16xf32> -> vector<20x16xf32>
    %18 = arith.addf %12, %17 : vector<20x16xf32>
    %c0_21 = arith.constant 0 : index
    %c6 = arith.constant 6 : index
    %c0_22 = arith.constant 0 : index
    %19 = vector.load %arg1[%c0_21, %c6, %c0_22] : memref<1x32x32xbf16, #tpu.memory_space<vmem>>, vector<1x20x32xbf16>
    %20 = vector.shape_cast %19 : vector<1x20x32xbf16> to vector<20x32xbf16>
    %c1_23 = arith.constant 1 : index
    %c1_24 = arith.constant 1 : index
    %c0_25 = arith.constant 0 : index
    %c0_26 = arith.constant 0 : index
    %21 = vector.load %arg2[%c1_23, %c1_24, %c0_25, %c0_26] : memref<2x2x32x16xbf16, #tpu.memory_space<vmem>>, vector<1x1x32x16xbf16>
    %22 = vector.shape_cast %21 : vector<1x1x32x16xbf16> to vector<32x16xbf16>
    %cst_27 = arith.constant dense<0.000000e+00> : vector<20x16xf32>
    %23 = tpu.matmul %20, %22, %cst_27 {dimension_numbers = #tpu.dot_dimension_numbers<[1], [0], [0], [1], [0, 0, 1, 1], [], []>} : vector<20x32xbf16>, vector<32x16xbf16>, vector<20x16xf32> -> vector<20x16xf32>
    %24 = arith.addf %18, %23 : vector<20x16xf32>
    %c0_28 = arith.constant 0 : index
    %c0_29 = arith.constant 0 : index
    %25 = vector.load %arg3[%c0_28, %c0_29] : memref<1x16xf32, #tpu.memory_space<vmem>>, vector<1x16xf32>
    %26 = vector.broadcast %25 : vector<1x16xf32> to vector<20x16xf32>
    %27 = arith.addf %24, %26 : vector<20x16xf32>
    %cst_30 = arith.constant 0.000000e+00 : f32
    %28 = vector.broadcast %cst_30 : f32 to vector<20x16xf32>
    %29 = arith.cmpf oge, %27, %28 : vector<20x16xf32>
    %cst_31 = arith.constant 2.000000e-01 : f32
    %30 = vector.broadcast %cst_31 : f32 to vector<20x16xf32>
    %31 = arith.mulf %30, %27 : vector<20x16xf32>
    %32 = arith.select %29, %27, %31 : vector<20x16xi1>, vector<20x16xf32>
    %33 = arith.truncf %32 : vector<20x16xf32> to vector<20x16xbf16>
    %c0_32 = arith.constant 0 : index
    %c0_33 = arith.constant 0 : index
    %34 = vector.load %arg4[%c0_32, %c0_33] : memref<16x2xbf16, #tpu.memory_space<vmem>>, vector<16x2xbf16>
    %cst_34 = arith.constant dense<0.000000e+00> : vector<20x2xf32>
    %35 = tpu.matmul %33, %34, %cst_34 {dimension_numbers = #tpu.dot_dimension_numbers<[1], [0], [0], [1], [0, 0, 1, 1], [], []>} : vector<20x16xbf16>, vector<16x2xbf16>, vector<20x2xf32> -> vector<20x2xf32>
    %c0_35 = arith.constant 0 : index
    %c0_36 = arith.constant 0 : index
    %36 = vector.load %arg5[%c0_35, %c0_36] : memref<1x2xf32, #tpu.memory_space<vmem>>, vector<1x2xf32>
    %37 = vector.broadcast %36 : vector<1x2xf32> to vector<20x2xf32>
    %38 = arith.addf %35, %37 : vector<20x2xf32>
    %c0_37 = arith.constant 0 : index
    %c0_38 = arith.constant 0 : index
    %c0_39 = arith.constant 0 : index
    %39 = vector.load %arg6[%c0_37, %c0_38, %c0_39] : memref<1x20x2xf32, #tpu.memory_space<vmem>>, vector<1x20x2xf32>
    %40 = vector.shape_cast %39 : vector<1x20x2xf32> to vector<20x2xf32>
    %41 = vector.shape_cast %38 : vector<20x2xf32> to vector<1x20x2xf32>
    tpu.vector_store %arg6[%c0_37, %c0_38, %c0_39], %41 {strides = array<i32>} : memref<1x20x2xf32, #tpu.memory_space<vmem>>, vector<1x20x2xf32>,
    return
  }
  func.func @transform_0(%arg0: i32) -> (i32, i32, i32) {
    %c0_i32 = arith.constant 0 : i32
    %c0_i32_0 = arith.constant 0 : i32
    %c0_i32_1 = arith.constant 0 : i32
    return %arg0, %c0_i32, %c0_i32_0 : i32, i32, i32
  }
  func.func @transform_1(%arg0: i32) -> (i32, i32, i32, i32) {
    %c0_i32 = arith.constant 0 : i32
    %c0_i32_0 = arith.constant 0 : i32
    %c0_i32_1 = arith.constant 0 : i32
    %c0_i32_2 = arith.constant 0 : i32
    %c0_i32_3 = arith.constant 0 : i32
    return %c0_i32, %c0_i32_0, %c0_i32_1, %c0_i32_2 : i32, i32, i32, i32
  }
  func.func @transform_2(%arg0: i32) -> (i32, i32) {
    %c0_i32 = arith.constant 0 : i32
    %c0_i32_0 = arith.constant 0 : i32
    %c0_i32_1 = arith.constant 0 : i32
    return %c0_i32, %c0_i32_0 : i32, i32
  }
  func.func @transform_3(%arg0: i32) -> (i32, i32) {
    %c0_i32 = arith.constant 0 : i32
    %c0_i32_0 = arith.constant 0 : i32
    %c0_i32_1 = arith.constant 0 : i32
    return %c0_i32, %c0_i32_0 : i32, i32
  }
  func.func @transform_4(%arg0: i32) -> (i32, i32) {
    %c0_i32 = arith.constant 0 : i32
    %c0_i32_0 = arith.constant 0 : i32
    %c0_i32_1 = arith.constant 0 : i32
    return %c0_i32, %c0_i32_0 : i32, i32
  }
  func.func @transform_5(%arg0: i32) -> (i32, i32, i32) {
    %c0_i32 = arith.constant 0 : i32
    %c0_i32_0 = arith.constant 0 : i32
    %c0_i32_1 = arith.constant 0 : i32
    return %arg0, %c0_i32, %c0_i32_0 : i32, i32, i32
  }
}

module attributes {stable_mosaic.version = 11 : i64} {
  func.func @_conv4x4s2_kernel(%arg0: i32, %arg1: i32, %arg2: memref<1x32x16xbf16, #tpu.memory_space<vmem>>, %arg3: memref<2x2x16x8xbf16, #tpu.memory_space<vmem>>, %arg4: memref<1x8xf32, #tpu.memory_space<vmem>>, %arg5: memref<1x20x8xbf16, #tpu.memory_space<vmem>>) attributes {dimension_semantics = [#tpu.dimension_semantics<parallel>, #tpu.dimension_semantics<parallel>], iteration_bounds = array<i64: 2, 1>, scalar_prefetch = 0 : i64, scratch_operands = 0 : i64, tpu.core_type = #tpu.core_type<tc>, window_params = [{transform_indices = @transform_0, window_bounds = array<i64: 1, 32, 16>}, {transform_indices = @transform_1, window_bounds = array<i64: 2, 2, 16, 8>}, {transform_indices = @transform_2, window_bounds = array<i64: 1, 8>}, {transform_indices = @transform_3, window_bounds = array<i64: 1, 20, 8>}]} {
    %cst = arith.constant 0.000000e+00 : f32
    %0 = vector.broadcast %cst : f32 to vector<20x8xf32>
    %c0 = arith.constant 0 : index
    %c0_0 = arith.constant 0 : index
    %c0_1 = arith.constant 0 : index
    %1 = vector.load %arg2[%c0, %c0_0, %c0_1] : memref<1x32x16xbf16, #tpu.memory_space<vmem>>, vector<1x20x16xbf16>
    %2 = vector.shape_cast %1 : vector<1x20x16xbf16> to vector<20x16xbf16>
    %c0_2 = arith.constant 0 : index
    %c0_3 = arith.constant 0 : index
    %c0_4 = arith.constant 0 : index
    %c0_5 = arith.constant 0 : index
    %3 = vector.load %arg3[%c0_2, %c0_3, %c0_4, %c0_5] : memref<2x2x16x8xbf16, #tpu.memory_space<vmem>>, vector<1x1x16x8xbf16>
    %4 = vector.shape_cast %3 : vector<1x1x16x8xbf16> to vector<16x8xbf16>
    %cst_6 = arith.constant dense<0.000000e+00> : vector<20x8xf32>
    %5 = tpu.matmul %2, %4, %cst_6 {dimension_numbers = #tpu.dot_dimension_numbers<[1], [0], [0], [1], [0, 0, 1, 1], [], []>} : vector<20x16xbf16>, vector<16x8xbf16>, vector<20x8xf32> -> vector<20x8xf32>
    %6 = arith.addf %0, %5 : vector<20x8xf32>
    %c0_7 = arith.constant 0 : index
    %c1 = arith.constant 1 : index
    %c0_8 = arith.constant 0 : index
    %7 = vector.load %arg2[%c0_7, %c1, %c0_8] : memref<1x32x16xbf16, #tpu.memory_space<vmem>>, vector<1x20x16xbf16>
    %8 = vector.shape_cast %7 : vector<1x20x16xbf16> to vector<20x16xbf16>
    %c0_9 = arith.constant 0 : index
    %c1_10 = arith.constant 1 : index
    %c0_11 = arith.constant 0 : index
    %c0_12 = arith.constant 0 : index
    %9 = vector.load %arg3[%c0_9, %c1_10, %c0_11, %c0_12] : memref<2x2x16x8xbf16, #tpu.memory_space<vmem>>, vector<1x1x16x8xbf16>
    %10 = vector.shape_cast %9 : vector<1x1x16x8xbf16> to vector<16x8xbf16>
    %cst_13 = arith.constant dense<0.000000e+00> : vector<20x8xf32>
    %11 = tpu.matmul %8, %10, %cst_13 {dimension_numbers = #tpu.dot_dimension_numbers<[1], [0], [0], [1], [0, 0, 1, 1], [], []>} : vector<20x16xbf16>, vector<16x8xbf16>, vector<20x8xf32> -> vector<20x8xf32>
    %12 = arith.addf %6, %11 : vector<20x8xf32>
    %c0_14 = arith.constant 0 : index
    %c5 = arith.constant 5 : index
    %c0_15 = arith.constant 0 : index
    %13 = vector.load %arg2[%c0_14, %c5, %c0_15] : memref<1x32x16xbf16, #tpu.memory_space<vmem>>, vector<1x20x16xbf16>
    %14 = vector.shape_cast %13 : vector<1x20x16xbf16> to vector<20x16xbf16>
    %c1_16 = arith.constant 1 : index
    %c0_17 = arith.constant 0 : index
    %c0_18 = arith.constant 0 : index
    %c0_19 = arith.constant 0 : index
    %15 = vector.load %arg3[%c1_16, %c0_17, %c0_18, %c0_19] : memref<2x2x16x8xbf16, #tpu.memory_space<vmem>>, vector<1x1x16x8xbf16>
    %16 = vector.shape_cast %15 : vector<1x1x16x8xbf16> to vector<16x8xbf16>
    %cst_20 = arith.constant dense<0.000000e+00> : vector<20x8xf32>
    %17 = tpu.matmul %14, %16, %cst_20 {dimension_numbers = #tpu.dot_dimension_numbers<[1], [0], [0], [1], [0, 0, 1, 1], [], []>} : vector<20x16xbf16>, vector<16x8xbf16>, vector<20x8xf32> -> vector<20x8xf32>
    %18 = arith.addf %12, %17 : vector<20x8xf32>
    %c0_21 = arith.constant 0 : index
    %c6 = arith.constant 6 : index
    %c0_22 = arith.constant 0 : index
    %19 = vector.load %arg2[%c0_21, %c6, %c0_22] : memref<1x32x16xbf16, #tpu.memory_space<vmem>>, vector<1x20x16xbf16>
    %20 = vector.shape_cast %19 : vector<1x20x16xbf16> to vector<20x16xbf16>
    %c1_23 = arith.constant 1 : index
    %c1_24 = arith.constant 1 : index
    %c0_25 = arith.constant 0 : index
    %c0_26 = arith.constant 0 : index
    %21 = vector.load %arg3[%c1_23, %c1_24, %c0_25, %c0_26] : memref<2x2x16x8xbf16, #tpu.memory_space<vmem>>, vector<1x1x16x8xbf16>
    %22 = vector.shape_cast %21 : vector<1x1x16x8xbf16> to vector<16x8xbf16>
    %cst_27 = arith.constant dense<0.000000e+00> : vector<20x8xf32>
    %23 = tpu.matmul %20, %22, %cst_27 {dimension_numbers = #tpu.dot_dimension_numbers<[1], [0], [0], [1], [0, 0, 1, 1], [], []>} : vector<20x16xbf16>, vector<16x8xbf16>, vector<20x8xf32> -> vector<20x8xf32>
    %24 = arith.addf %18, %23 : vector<20x8xf32>
    %c0_28 = arith.constant 0 : index
    %c0_29 = arith.constant 0 : index
    %25 = vector.load %arg4[%c0_28, %c0_29] : memref<1x8xf32, #tpu.memory_space<vmem>>, vector<1x8xf32>
    %26 = vector.broadcast %25 : vector<1x8xf32> to vector<20x8xf32>
    %27 = arith.addf %24, %26 : vector<20x8xf32>
    %cst_30 = arith.constant 0.000000e+00 : f32
    %28 = vector.broadcast %cst_30 : f32 to vector<20x8xf32>
    %29 = arith.cmpf oge, %27, %28 : vector<20x8xf32>
    %cst_31 = arith.constant 2.000000e-01 : f32
    %30 = vector.broadcast %cst_31 : f32 to vector<20x8xf32>
    %31 = arith.mulf %30, %27 : vector<20x8xf32>
    %32 = arith.select %29, %27, %31 : vector<20x8xi1>, vector<20x8xf32>
    %33 = arith.truncf %32 : vector<20x8xf32> to vector<20x8xbf16>
    %c0_32 = arith.constant 0 : index
    %c0_33 = arith.constant 0 : index
    %c0_34 = arith.constant 0 : index
    %34 = vector.load %arg5[%c0_32, %c0_33, %c0_34] : memref<1x20x8xbf16, #tpu.memory_space<vmem>>, vector<1x20x8xbf16>
    %35 = vector.shape_cast %34 : vector<1x20x8xbf16> to vector<20x8xbf16>
    %36 = vector.shape_cast %33 : vector<20x8xbf16> to vector<1x20x8xbf16>
    tpu.vector_store %arg5[%c0_32, %c0_33, %c0_34], %36 {strides = array<i32>} : memref<1x20x8xbf16, #tpu.memory_space<vmem>>, vector<1x20x8xbf16>,
    return
  }
  func.func @transform_0(%arg0: i32, %arg1: i32) -> (i32, i32, i32) {
    %c0_i32 = arith.constant 0 : i32
    %c0_i32_0 = arith.constant 0 : i32
    %c0_i32_1 = arith.constant 0 : i32
    return %arg0, %c0_i32, %c0_i32_0 : i32, i32, i32
  }
  func.func @transform_1(%arg0: i32, %arg1: i32) -> (i32, i32, i32, i32) {
    %c0_i32 = arith.constant 0 : i32
    %c0_i32_0 = arith.constant 0 : i32
    %c0_i32_1 = arith.constant 0 : i32
    %c0_i32_2 = arith.constant 0 : i32
    return %c0_i32, %c0_i32_0, %c0_i32_1, %arg1 : i32, i32, i32, i32
  }
  func.func @transform_2(%arg0: i32, %arg1: i32) -> (i32, i32) {
    %c0_i32 = arith.constant 0 : i32
    %c0_i32_0 = arith.constant 0 : i32
    return %c0_i32, %arg1 : i32, i32
  }
  func.func @transform_3(%arg0: i32, %arg1: i32) -> (i32, i32, i32) {
    %c0_i32 = arith.constant 0 : i32
    %c0_i32_0 = arith.constant 0 : i32
    return %arg0, %c0_i32, %arg1 : i32, i32, i32
  }
}

module attributes {stable_mosaic.version = 11 : i64} {
  func.func @_conv4x4s2_head_kernel(%arg0: i32, %arg1: memref<1x16x32xbf16, #tpu.memory_space<vmem>>, %arg2: memref<2x2x32x16xbf16, #tpu.memory_space<vmem>>, %arg3: memref<1x16xf32, #tpu.memory_space<vmem>>, %arg4: memref<16x4xbf16, #tpu.memory_space<vmem>>, %arg5: memref<1x4xf32, #tpu.memory_space<vmem>>, %arg6: memref<1x6x4xf32, #tpu.memory_space<vmem>>) attributes {dimension_semantics = [#tpu.dimension_semantics<parallel>], iteration_bounds = array<i64: 2>, scalar_prefetch = 0 : i64, scratch_operands = 0 : i64, tpu.core_type = #tpu.core_type<tc>, window_params = [{transform_indices = @transform_0, window_bounds = array<i64: 1, 16, 32>}, {pipeline_mode = #tpu.pipeline_mode<synchronous>, transform_indices = @transform_1, window_bounds = array<i64: 2, 2, 32, 16>}, {pipeline_mode = #tpu.pipeline_mode<synchronous>, transform_indices = @transform_2, window_bounds = array<i64: 1, 16>}, {pipeline_mode = #tpu.pipeline_mode<synchronous>, transform_indices = @transform_3, window_bounds = array<i64: 16, 4>}, {pipeline_mode = #tpu.pipeline_mode<synchronous>, transform_indices = @transform_4, window_bounds = array<i64: 1, 4>}, {transform_indices = @transform_5, window_bounds = array<i64: 1, 6, 4>}]} {
    %cst = arith.constant 0.000000e+00 : f32
    %0 = vector.broadcast %cst : f32 to vector<6x16xf32>
    %c0 = arith.constant 0 : index
    %c0_0 = arith.constant 0 : index
    %c0_1 = arith.constant 0 : index
    %1 = vector.load %arg1[%c0, %c0_0, %c0_1] : memref<1x16x32xbf16, #tpu.memory_space<vmem>>, vector<1x6x32xbf16>
    %2 = vector.shape_cast %1 : vector<1x6x32xbf16> to vector<6x32xbf16>
    %c0_2 = arith.constant 0 : index
    %c0_3 = arith.constant 0 : index
    %c0_4 = arith.constant 0 : index
    %c0_5 = arith.constant 0 : index
    %3 = vector.load %arg2[%c0_2, %c0_3, %c0_4, %c0_5] : memref<2x2x32x16xbf16, #tpu.memory_space<vmem>>, vector<1x1x32x16xbf16>
    %4 = vector.shape_cast %3 : vector<1x1x32x16xbf16> to vector<32x16xbf16>
    %cst_6 = arith.constant dense<0.000000e+00> : vector<6x16xf32>
    %5 = tpu.matmul %2, %4, %cst_6 {dimension_numbers = #tpu.dot_dimension_numbers<[1], [0], [0], [1], [0, 0, 1, 1], [], []>} : vector<6x32xbf16>, vector<32x16xbf16>, vector<6x16xf32> -> vector<6x16xf32>
    %6 = arith.addf %0, %5 : vector<6x16xf32>
    %c0_7 = arith.constant 0 : index
    %c1 = arith.constant 1 : index
    %c0_8 = arith.constant 0 : index
    %7 = vector.load %arg1[%c0_7, %c1, %c0_8] : memref<1x16x32xbf16, #tpu.memory_space<vmem>>, vector<1x6x32xbf16>
    %8 = vector.shape_cast %7 : vector<1x6x32xbf16> to vector<6x32xbf16>
    %c0_9 = arith.constant 0 : index
    %c1_10 = arith.constant 1 : index
    %c0_11 = arith.constant 0 : index
    %c0_12 = arith.constant 0 : index
    %9 = vector.load %arg2[%c0_9, %c1_10, %c0_11, %c0_12] : memref<2x2x32x16xbf16, #tpu.memory_space<vmem>>, vector<1x1x32x16xbf16>
    %10 = vector.shape_cast %9 : vector<1x1x32x16xbf16> to vector<32x16xbf16>
    %cst_13 = arith.constant dense<0.000000e+00> : vector<6x16xf32>
    %11 = tpu.matmul %8, %10, %cst_13 {dimension_numbers = #tpu.dot_dimension_numbers<[1], [0], [0], [1], [0, 0, 1, 1], [], []>} : vector<6x32xbf16>, vector<32x16xbf16>, vector<6x16xf32> -> vector<6x16xf32>
    %12 = arith.addf %6, %11 : vector<6x16xf32>
    %c0_14 = arith.constant 0 : index
    %c3 = arith.constant 3 : index
    %c0_15 = arith.constant 0 : index
    %13 = vector.load %arg1[%c0_14, %c3, %c0_15] : memref<1x16x32xbf16, #tpu.memory_space<vmem>>, vector<1x6x32xbf16>
    %14 = vector.shape_cast %13 : vector<1x6x32xbf16> to vector<6x32xbf16>
    %c1_16 = arith.constant 1 : index
    %c0_17 = arith.constant 0 : index
    %c0_18 = arith.constant 0 : index
    %c0_19 = arith.constant 0 : index
    %15 = vector.load %arg2[%c1_16, %c0_17, %c0_18, %c0_19] : memref<2x2x32x16xbf16, #tpu.memory_space<vmem>>, vector<1x1x32x16xbf16>
    %16 = vector.shape_cast %15 : vector<1x1x32x16xbf16> to vector<32x16xbf16>
    %cst_20 = arith.constant dense<0.000000e+00> : vector<6x16xf32>
    %17 = tpu.matmul %14, %16, %cst_20 {dimension_numbers = #tpu.dot_dimension_numbers<[1], [0], [0], [1], [0, 0, 1, 1], [], []>} : vector<6x32xbf16>, vector<32x16xbf16>, vector<6x16xf32> -> vector<6x16xf32>
    %18 = arith.addf %12, %17 : vector<6x16xf32>
    %c0_21 = arith.constant 0 : index
    %c4 = arith.constant 4 : index
    %c0_22 = arith.constant 0 : index
    %19 = vector.load %arg1[%c0_21, %c4, %c0_22] : memref<1x16x32xbf16, #tpu.memory_space<vmem>>, vector<1x6x32xbf16>
    %20 = vector.shape_cast %19 : vector<1x6x32xbf16> to vector<6x32xbf16>
    %c1_23 = arith.constant 1 : index
    %c1_24 = arith.constant 1 : index
    %c0_25 = arith.constant 0 : index
    %c0_26 = arith.constant 0 : index
    %21 = vector.load %arg2[%c1_23, %c1_24, %c0_25, %c0_26] : memref<2x2x32x16xbf16, #tpu.memory_space<vmem>>, vector<1x1x32x16xbf16>
    %22 = vector.shape_cast %21 : vector<1x1x32x16xbf16> to vector<32x16xbf16>
    %cst_27 = arith.constant dense<0.000000e+00> : vector<6x16xf32>
    %23 = tpu.matmul %20, %22, %cst_27 {dimension_numbers = #tpu.dot_dimension_numbers<[1], [0], [0], [1], [0, 0, 1, 1], [], []>} : vector<6x32xbf16>, vector<32x16xbf16>, vector<6x16xf32> -> vector<6x16xf32>
    %24 = arith.addf %18, %23 : vector<6x16xf32>
    %c0_28 = arith.constant 0 : index
    %c0_29 = arith.constant 0 : index
    %25 = vector.load %arg3[%c0_28, %c0_29] : memref<1x16xf32, #tpu.memory_space<vmem>>, vector<1x16xf32>
    %26 = vector.broadcast %25 : vector<1x16xf32> to vector<6x16xf32>
    %27 = arith.addf %24, %26 : vector<6x16xf32>
    %cst_30 = arith.constant 0.000000e+00 : f32
    %28 = vector.broadcast %cst_30 : f32 to vector<6x16xf32>
    %29 = arith.cmpf oge, %27, %28 : vector<6x16xf32>
    %cst_31 = arith.constant 2.000000e-01 : f32
    %30 = vector.broadcast %cst_31 : f32 to vector<6x16xf32>
    %31 = arith.mulf %30, %27 : vector<6x16xf32>
    %32 = arith.select %29, %27, %31 : vector<6x16xi1>, vector<6x16xf32>
    %33 = arith.truncf %32 : vector<6x16xf32> to vector<6x16xbf16>
    %c0_32 = arith.constant 0 : index
    %c0_33 = arith.constant 0 : index
    %34 = vector.load %arg4[%c0_32, %c0_33] : memref<16x4xbf16, #tpu.memory_space<vmem>>, vector<16x4xbf16>
    %cst_34 = arith.constant dense<0.000000e+00> : vector<6x4xf32>
    %35 = tpu.matmul %33, %34, %cst_34 {dimension_numbers = #tpu.dot_dimension_numbers<[1], [0], [0], [1], [0, 0, 1, 1], [], []>} : vector<6x16xbf16>, vector<16x4xbf16>, vector<6x4xf32> -> vector<6x4xf32>
    %c0_35 = arith.constant 0 : index
    %c0_36 = arith.constant 0 : index
    %36 = vector.load %arg5[%c0_35, %c0_36] : memref<1x4xf32, #tpu.memory_space<vmem>>, vector<1x4xf32>
    %37 = vector.broadcast %36 : vector<1x4xf32> to vector<6x4xf32>
    %38 = arith.addf %35, %37 : vector<6x4xf32>
    %c0_37 = arith.constant 0 : index
    %c0_38 = arith.constant 0 : index
    %c0_39 = arith.constant 0 : index
    %39 = vector.load %arg6[%c0_37, %c0_38, %c0_39] : memref<1x6x4xf32, #tpu.memory_space<vmem>>, vector<1x6x4xf32>
    %40 = vector.shape_cast %39 : vector<1x6x4xf32> to vector<6x4xf32>
    %41 = vector.shape_cast %38 : vector<6x4xf32> to vector<1x6x4xf32>
    tpu.vector_store %arg6[%c0_37, %c0_38, %c0_39], %41 {strides = array<i32>} : memref<1x6x4xf32, #tpu.memory_space<vmem>>, vector<1x6x4xf32>,
    return
  }
  func.func @transform_0(%arg0: i32) -> (i32, i32, i32) {
    %c0_i32 = arith.constant 0 : i32
    %c0_i32_0 = arith.constant 0 : i32
    %c0_i32_1 = arith.constant 0 : i32
    return %arg0, %c0_i32, %c0_i32_0 : i32, i32, i32
  }
  func.func @transform_1(%arg0: i32) -> (i32, i32, i32, i32) {
    %c0_i32 = arith.constant 0 : i32
    %c0_i32_0 = arith.constant 0 : i32
    %c0_i32_1 = arith.constant 0 : i32
    %c0_i32_2 = arith.constant 0 : i32
    %c0_i32_3 = arith.constant 0 : i32
    return %c0_i32, %c0_i32_0, %c0_i32_1, %c0_i32_2 : i32, i32, i32, i32
  }
  func.func @transform_2(%arg0: i32) -> (i32, i32) {
    %c0_i32 = arith.constant 0 : i32
    %c0_i32_0 = arith.constant 0 : i32
    %c0_i32_1 = arith.constant 0 : i32
    return %c0_i32, %c0_i32_0 : i32, i32
  }
  func.func @transform_3(%arg0: i32) -> (i32, i32) {
    %c0_i32 = arith.constant 0 : i32
    %c0_i32_0 = arith.constant 0 : i32
    %c0_i32_1 = arith.constant 0 : i32
    return %c0_i32, %c0_i32_0 : i32, i32
  }
  func.func @transform_4(%arg0: i32) -> (i32, i32) {
    %c0_i32 = arith.constant 0 : i32
    %c0_i32_0 = arith.constant 0 : i32
    %c0_i32_1 = arith.constant 0 : i32
    return %c0_i32, %c0_i32_0 : i32, i32
  }
  func.func @transform_5(%arg0: i32) -> (i32, i32, i32) {
    %c0_i32 = arith.constant 0 : i32
    %c0_i32_0 = arith.constant 0 : i32
    %c0_i32_1 = arith.constant 0 : i32
    return %arg0, %c0_i32, %c0_i32_0 : i32, i32, i32
  }
}

module attributes {stable_mosaic.version = 11 : i64} {
  func.func @_conv4x4s2_kernel(%arg0: i32, %arg1: i32, %arg2: memref<1x16x16xbf16, #tpu.memory_space<vmem>>, %arg3: memref<2x2x16x8xbf16, #tpu.memory_space<vmem>>, %arg4: memref<1x8xf32, #tpu.memory_space<vmem>>, %arg5: memref<1x6x8xbf16, #tpu.memory_space<vmem>>) attributes {dimension_semantics = [#tpu.dimension_semantics<parallel>, #tpu.dimension_semantics<parallel>], iteration_bounds = array<i64: 2, 1>, scalar_prefetch = 0 : i64, scratch_operands = 0 : i64, tpu.core_type = #tpu.core_type<tc>, window_params = [{transform_indices = @transform_0, window_bounds = array<i64: 1, 16, 16>}, {transform_indices = @transform_1, window_bounds = array<i64: 2, 2, 16, 8>}, {transform_indices = @transform_2, window_bounds = array<i64: 1, 8>}, {transform_indices = @transform_3, window_bounds = array<i64: 1, 6, 8>}]} {
    %cst = arith.constant 0.000000e+00 : f32
    %0 = vector.broadcast %cst : f32 to vector<6x8xf32>
    %c0 = arith.constant 0 : index
    %c0_0 = arith.constant 0 : index
    %c0_1 = arith.constant 0 : index
    %1 = vector.load %arg2[%c0, %c0_0, %c0_1] : memref<1x16x16xbf16, #tpu.memory_space<vmem>>, vector<1x6x16xbf16>
    %2 = vector.shape_cast %1 : vector<1x6x16xbf16> to vector<6x16xbf16>
    %c0_2 = arith.constant 0 : index
    %c0_3 = arith.constant 0 : index
    %c0_4 = arith.constant 0 : index
    %c0_5 = arith.constant 0 : index
    %3 = vector.load %arg3[%c0_2, %c0_3, %c0_4, %c0_5] : memref<2x2x16x8xbf16, #tpu.memory_space<vmem>>, vector<1x1x16x8xbf16>
    %4 = vector.shape_cast %3 : vector<1x1x16x8xbf16> to vector<16x8xbf16>
    %cst_6 = arith.constant dense<0.000000e+00> : vector<6x8xf32>
    %5 = tpu.matmul %2, %4, %cst_6 {dimension_numbers = #tpu.dot_dimension_numbers<[1], [0], [0], [1], [0, 0, 1, 1], [], []>} : vector<6x16xbf16>, vector<16x8xbf16>, vector<6x8xf32> -> vector<6x8xf32>
    %6 = arith.addf %0, %5 : vector<6x8xf32>
    %c0_7 = arith.constant 0 : index
    %c1 = arith.constant 1 : index
    %c0_8 = arith.constant 0 : index
    %7 = vector.load %arg2[%c0_7, %c1, %c0_8] : memref<1x16x16xbf16, #tpu.memory_space<vmem>>, vector<1x6x16xbf16>
    %8 = vector.shape_cast %7 : vector<1x6x16xbf16> to vector<6x16xbf16>
    %c0_9 = arith.constant 0 : index
    %c1_10 = arith.constant 1 : index
    %c0_11 = arith.constant 0 : index
    %c0_12 = arith.constant 0 : index
    %9 = vector.load %arg3[%c0_9, %c1_10, %c0_11, %c0_12] : memref<2x2x16x8xbf16, #tpu.memory_space<vmem>>, vector<1x1x16x8xbf16>
    %10 = vector.shape_cast %9 : vector<1x1x16x8xbf16> to vector<16x8xbf16>
    %cst_13 = arith.constant dense<0.000000e+00> : vector<6x8xf32>
    %11 = tpu.matmul %8, %10, %cst_13 {dimension_numbers = #tpu.dot_dimension_numbers<[1], [0], [0], [1], [0, 0, 1, 1], [], []>} : vector<6x16xbf16>, vector<16x8xbf16>, vector<6x8xf32> -> vector<6x8xf32>
    %12 = arith.addf %6, %11 : vector<6x8xf32>
    %c0_14 = arith.constant 0 : index
    %c3 = arith.constant 3 : index
    %c0_15 = arith.constant 0 : index
    %13 = vector.load %arg2[%c0_14, %c3, %c0_15] : memref<1x16x16xbf16, #tpu.memory_space<vmem>>, vector<1x6x16xbf16>
    %14 = vector.shape_cast %13 : vector<1x6x16xbf16> to vector<6x16xbf16>
    %c1_16 = arith.constant 1 : index
    %c0_17 = arith.constant 0 : index
    %c0_18 = arith.constant 0 : index
    %c0_19 = arith.constant 0 : index
    %15 = vector.load %arg3[%c1_16, %c0_17, %c0_18, %c0_19] : memref<2x2x16x8xbf16, #tpu.memory_space<vmem>>, vector<1x1x16x8xbf16>
    %16 = vector.shape_cast %15 : vector<1x1x16x8xbf16> to vector<16x8xbf16>
    %cst_20 = arith.constant dense<0.000000e+00> : vector<6x8xf32>
    %17 = tpu.matmul %14, %16, %cst_20 {dimension_numbers = #tpu.dot_dimension_numbers<[1], [0], [0], [1], [0, 0, 1, 1], [], []>} : vector<6x16xbf16>, vector<16x8xbf16>, vector<6x8xf32> -> vector<6x8xf32>
    %18 = arith.addf %12, %17 : vector<6x8xf32>
    %c0_21 = arith.constant 0 : index
    %c4 = arith.constant 4 : index
    %c0_22 = arith.constant 0 : index
    %19 = vector.load %arg2[%c0_21, %c4, %c0_22] : memref<1x16x16xbf16, #tpu.memory_space<vmem>>, vector<1x6x16xbf16>
    %20 = vector.shape_cast %19 : vector<1x6x16xbf16> to vector<6x16xbf16>
    %c1_23 = arith.constant 1 : index
    %c1_24 = arith.constant 1 : index
    %c0_25 = arith.constant 0 : index
    %c0_26 = arith.constant 0 : index
    %21 = vector.load %arg3[%c1_23, %c1_24, %c0_25, %c0_26] : memref<2x2x16x8xbf16, #tpu.memory_space<vmem>>, vector<1x1x16x8xbf16>
    %22 = vector.shape_cast %21 : vector<1x1x16x8xbf16> to vector<16x8xbf16>
    %cst_27 = arith.constant dense<0.000000e+00> : vector<6x8xf32>
    %23 = tpu.matmul %20, %22, %cst_27 {dimension_numbers = #tpu.dot_dimension_numbers<[1], [0], [0], [1], [0, 0, 1, 1], [], []>} : vector<6x16xbf16>, vector<16x8xbf16>, vector<6x8xf32> -> vector<6x8xf32>
    %24 = arith.addf %18, %23 : vector<6x8xf32>
    %c0_28 = arith.constant 0 : index
    %c0_29 = arith.constant 0 : index
    %25 = vector.load %arg4[%c0_28, %c0_29] : memref<1x8xf32, #tpu.memory_space<vmem>>, vector<1x8xf32>
    %26 = vector.broadcast %25 : vector<1x8xf32> to vector<6x8xf32>
    %27 = arith.addf %24, %26 : vector<6x8xf32>
    %cst_30 = arith.constant 0.000000e+00 : f32
    %28 = vector.broadcast %cst_30 : f32 to vector<6x8xf32>
    %29 = arith.cmpf oge, %27, %28 : vector<6x8xf32>
    %cst_31 = arith.constant 2.000000e-01 : f32
    %30 = vector.broadcast %cst_31 : f32 to vector<6x8xf32>
    %31 = arith.mulf %30, %27 : vector<6x8xf32>
    %32 = arith.select %29, %27, %31 : vector<6x8xi1>, vector<6x8xf32>
    %33 = arith.truncf %32 : vector<6x8xf32> to vector<6x8xbf16>
    %c0_32 = arith.constant 0 : index
    %c0_33 = arith.constant 0 : index
    %c0_34 = arith.constant 0 : index
    %34 = vector.load %arg5[%c0_32, %c0_33, %c0_34] : memref<1x6x8xbf16, #tpu.memory_space<vmem>>, vector<1x6x8xbf16>
    %35 = vector.shape_cast %34 : vector<1x6x8xbf16> to vector<6x8xbf16>
    %36 = vector.shape_cast %33 : vector<6x8xbf16> to vector<1x6x8xbf16>
    tpu.vector_store %arg5[%c0_32, %c0_33, %c0_34], %36 {strides = array<i32>} : memref<1x6x8xbf16, #tpu.memory_space<vmem>>, vector<1x6x8xbf16>,
    return
  }
  func.func @transform_0(%arg0: i32, %arg1: i32) -> (i32, i32, i32) {
    %c0_i32 = arith.constant 0 : i32
    %c0_i32_0 = arith.constant 0 : i32
    %c0_i32_1 = arith.constant 0 : i32
    return %arg0, %c0_i32, %c0_i32_0 : i32, i32, i32
  }
  func.func @transform_1(%arg0: i32, %arg1: i32) -> (i32, i32, i32, i32) {
    %c0_i32 = arith.constant 0 : i32
    %c0_i32_0 = arith.constant 0 : i32
    %c0_i32_1 = arith.constant 0 : i32
    %c0_i32_2 = arith.constant 0 : i32
    return %c0_i32, %c0_i32_0, %c0_i32_1, %arg1 : i32, i32, i32, i32
  }
  func.func @transform_2(%arg0: i32, %arg1: i32) -> (i32, i32) {
    %c0_i32 = arith.constant 0 : i32
    %c0_i32_0 = arith.constant 0 : i32
    return %c0_i32, %arg1 : i32, i32
  }
  func.func @transform_3(%arg0: i32, %arg1: i32) -> (i32, i32, i32) {
    %c0_i32 = arith.constant 0 : i32
    %c0_i32_0 = arith.constant 0 : i32
    return %arg0, %c0_i32, %arg1 : i32, i32, i32
  }
}

module attributes {stable_mosaic.version = 11 : i64} {
  func.func @_conv4x4s2_head_kernel(%arg0: i32, %arg1: memref<1x8x32xbf16, #tpu.memory_space<vmem>>, %arg2: memref<2x2x32x16xbf16, #tpu.memory_space<vmem>>, %arg3: memref<1x16xf32, #tpu.memory_space<vmem>>, %arg4: memref<16x8xbf16, #tpu.memory_space<vmem>>, %arg5: memref<1x8xf32, #tpu.memory_space<vmem>>, %arg6: memref<1x2x8xf32, #tpu.memory_space<vmem>>) attributes {dimension_semantics = [#tpu.dimension_semantics<parallel>], iteration_bounds = array<i64: 2>, scalar_prefetch = 0 : i64, scratch_operands = 0 : i64, tpu.core_type = #tpu.core_type<tc>, window_params = [{transform_indices = @transform_0, window_bounds = array<i64: 1, 8, 32>}, {pipeline_mode = #tpu.pipeline_mode<synchronous>, transform_indices = @transform_1, window_bounds = array<i64: 2, 2, 32, 16>}, {pipeline_mode = #tpu.pipeline_mode<synchronous>, transform_indices = @transform_2, window_bounds = array<i64: 1, 16>}, {pipeline_mode = #tpu.pipeline_mode<synchronous>, transform_indices = @transform_3, window_bounds = array<i64: 16, 8>}, {pipeline_mode = #tpu.pipeline_mode<synchronous>, transform_indices = @transform_4, window_bounds = array<i64: 1, 8>}, {transform_indices = @transform_5, window_bounds = array<i64: 1, 2, 8>}]} {
    %cst = arith.constant 0.000000e+00 : f32
    %0 = vector.broadcast %cst : f32 to vector<2x16xf32>
    %c0 = arith.constant 0 : index
    %c0_0 = arith.constant 0 : index
    %c0_1 = arith.constant 0 : index
    %1 = vector.load %arg1[%c0, %c0_0, %c0_1] : memref<1x8x32xbf16, #tpu.memory_space<vmem>>, vector<1x2x32xbf16>
    %2 = vector.shape_cast %1 : vector<1x2x32xbf16> to vector<2x32xbf16>
    %c0_2 = arith.constant 0 : index
    %c0_3 = arith.constant 0 : index
    %c0_4 = arith.constant 0 : index
    %c0_5 = arith.constant 0 : index
    %3 = vector.load %arg2[%c0_2, %c0_3, %c0_4, %c0_5] : memref<2x2x32x16xbf16, #tpu.memory_space<vmem>>, vector<1x1x32x16xbf16>
    %4 = vector.shape_cast %3 : vector<1x1x32x16xbf16> to vector<32x16xbf16>
    %cst_6 = arith.constant dense<0.000000e+00> : vector<2x16xf32>
    %5 = tpu.matmul %2, %4, %cst_6 {dimension_numbers = #tpu.dot_dimension_numbers<[1], [0], [0], [1], [0, 0, 1, 1], [], []>} : vector<2x32xbf16>, vector<32x16xbf16>, vector<2x16xf32> -> vector<2x16xf32>
    %6 = arith.addf %0, %5 : vector<2x16xf32>
    %c0_7 = arith.constant 0 : index
    %c1 = arith.constant 1 : index
    %c0_8 = arith.constant 0 : index
    %7 = vector.load %arg1[%c0_7, %c1, %c0_8] : memref<1x8x32xbf16, #tpu.memory_space<vmem>>, vector<1x2x32xbf16>
    %8 = vector.shape_cast %7 : vector<1x2x32xbf16> to vector<2x32xbf16>
    %c0_9 = arith.constant 0 : index
    %c1_10 = arith.constant 1 : index
    %c0_11 = arith.constant 0 : index
    %c0_12 = arith.constant 0 : index
    %9 = vector.load %arg2[%c0_9, %c1_10, %c0_11, %c0_12] : memref<2x2x32x16xbf16, #tpu.memory_space<vmem>>, vector<1x1x32x16xbf16>
    %10 = vector.shape_cast %9 : vector<1x1x32x16xbf16> to vector<32x16xbf16>
    %cst_13 = arith.constant dense<0.000000e+00> : vector<2x16xf32>
    %11 = tpu.matmul %8, %10, %cst_13 {dimension_numbers = #tpu.dot_dimension_numbers<[1], [0], [0], [1], [0, 0, 1, 1], [], []>} : vector<2x32xbf16>, vector<32x16xbf16>, vector<2x16xf32> -> vector<2x16xf32>
    %12 = arith.addf %6, %11 : vector<2x16xf32>
    %c0_14 = arith.constant 0 : index
    %c2 = arith.constant 2 : index
    %c0_15 = arith.constant 0 : index
    %13 = vector.load %arg1[%c0_14, %c2, %c0_15] : memref<1x8x32xbf16, #tpu.memory_space<vmem>>, vector<1x2x32xbf16>
    %14 = vector.shape_cast %13 : vector<1x2x32xbf16> to vector<2x32xbf16>
    %c1_16 = arith.constant 1 : index
    %c0_17 = arith.constant 0 : index
    %c0_18 = arith.constant 0 : index
    %c0_19 = arith.constant 0 : index
    %15 = vector.load %arg2[%c1_16, %c0_17, %c0_18, %c0_19] : memref<2x2x32x16xbf16, #tpu.memory_space<vmem>>, vector<1x1x32x16xbf16>
    %16 = vector.shape_cast %15 : vector<1x1x32x16xbf16> to vector<32x16xbf16>
    %cst_20 = arith.constant dense<0.000000e+00> : vector<2x16xf32>
    %17 = tpu.matmul %14, %16, %cst_20 {dimension_numbers = #tpu.dot_dimension_numbers<[1], [0], [0], [1], [0, 0, 1, 1], [], []>} : vector<2x32xbf16>, vector<32x16xbf16>, vector<2x16xf32> -> vector<2x16xf32>
    %18 = arith.addf %12, %17 : vector<2x16xf32>
    %c0_21 = arith.constant 0 : index
    %c3 = arith.constant 3 : index
    %c0_22 = arith.constant 0 : index
    %19 = vector.load %arg1[%c0_21, %c3, %c0_22] : memref<1x8x32xbf16, #tpu.memory_space<vmem>>, vector<1x2x32xbf16>
    %20 = vector.shape_cast %19 : vector<1x2x32xbf16> to vector<2x32xbf16>
    %c1_23 = arith.constant 1 : index
    %c1_24 = arith.constant 1 : index
    %c0_25 = arith.constant 0 : index
    %c0_26 = arith.constant 0 : index
    %21 = vector.load %arg2[%c1_23, %c1_24, %c0_25, %c0_26] : memref<2x2x32x16xbf16, #tpu.memory_space<vmem>>, vector<1x1x32x16xbf16>
    %22 = vector.shape_cast %21 : vector<1x1x32x16xbf16> to vector<32x16xbf16>
    %cst_27 = arith.constant dense<0.000000e+00> : vector<2x16xf32>
    %23 = tpu.matmul %20, %22, %cst_27 {dimension_numbers = #tpu.dot_dimension_numbers<[1], [0], [0], [1], [0, 0, 1, 1], [], []>} : vector<2x32xbf16>, vector<32x16xbf16>, vector<2x16xf32> -> vector<2x16xf32>
    %24 = arith.addf %18, %23 : vector<2x16xf32>
    %c0_28 = arith.constant 0 : index
    %c0_29 = arith.constant 0 : index
    %25 = vector.load %arg3[%c0_28, %c0_29] : memref<1x16xf32, #tpu.memory_space<vmem>>, vector<1x16xf32>
    %26 = vector.broadcast %25 : vector<1x16xf32> to vector<2x16xf32>
    %27 = arith.addf %24, %26 : vector<2x16xf32>
    %cst_30 = arith.constant 0.000000e+00 : f32
    %28 = vector.broadcast %cst_30 : f32 to vector<2x16xf32>
    %29 = arith.cmpf oge, %27, %28 : vector<2x16xf32>
    %cst_31 = arith.constant 2.000000e-01 : f32
    %30 = vector.broadcast %cst_31 : f32 to vector<2x16xf32>
    %31 = arith.mulf %30, %27 : vector<2x16xf32>
    %32 = arith.select %29, %27, %31 : vector<2x16xi1>, vector<2x16xf32>
    %33 = arith.truncf %32 : vector<2x16xf32> to vector<2x16xbf16>
    %c0_32 = arith.constant 0 : index
    %c0_33 = arith.constant 0 : index
    %34 = vector.load %arg4[%c0_32, %c0_33] : memref<16x8xbf16, #tpu.memory_space<vmem>>, vector<16x8xbf16>
    %cst_34 = arith.constant dense<0.000000e+00> : vector<2x8xf32>
    %35 = tpu.matmul %33, %34, %cst_34 {dimension_numbers = #tpu.dot_dimension_numbers<[1], [0], [0], [1], [0, 0, 1, 1], [], []>} : vector<2x16xbf16>, vector<16x8xbf16>, vector<2x8xf32> -> vector<2x8xf32>
    %c0_35 = arith.constant 0 : index
    %c0_36 = arith.constant 0 : index
    %36 = vector.load %arg5[%c0_35, %c0_36] : memref<1x8xf32, #tpu.memory_space<vmem>>, vector<1x8xf32>
    %37 = vector.broadcast %36 : vector<1x8xf32> to vector<2x8xf32>
    %38 = arith.addf %35, %37 : vector<2x8xf32>
    %c0_37 = arith.constant 0 : index
    %c0_38 = arith.constant 0 : index
    %c0_39 = arith.constant 0 : index
    %39 = vector.load %arg6[%c0_37, %c0_38, %c0_39] : memref<1x2x8xf32, #tpu.memory_space<vmem>>, vector<1x2x8xf32>
    %40 = vector.shape_cast %39 : vector<1x2x8xf32> to vector<2x8xf32>
    %41 = vector.shape_cast %38 : vector<2x8xf32> to vector<1x2x8xf32>
    tpu.vector_store %arg6[%c0_37, %c0_38, %c0_39], %41 {strides = array<i32>} : memref<1x2x8xf32, #tpu.memory_space<vmem>>, vector<1x2x8xf32>,
    return
  }
  func.func @transform_0(%arg0: i32) -> (i32, i32, i32) {
    %c0_i32 = arith.constant 0 : i32
    %c0_i32_0 = arith.constant 0 : i32
    %c0_i32_1 = arith.constant 0 : i32
    return %arg0, %c0_i32, %c0_i32_0 : i32, i32, i32
  }
  func.func @transform_1(%arg0: i32) -> (i32, i32, i32, i32) {
    %c0_i32 = arith.constant 0 : i32
    %c0_i32_0 = arith.constant 0 : i32
    %c0_i32_1 = arith.constant 0 : i32
    %c0_i32_2 = arith.constant 0 : i32
    %c0_i32_3 = arith.constant 0 : i32
    return %c0_i32, %c0_i32_0, %c0_i32_1, %c0_i32_2 : i32, i32, i32, i32
  }
  func.func @transform_2(%arg0: i32) -> (i32, i32) {
    %c0_i32 = arith.constant 0 : i32
    %c0_i32_0 = arith.constant 0 : i32
    %c0_i32_1 = arith.constant 0 : i32
    return %c0_i32, %c0_i32_0 : i32, i32
  }
  func.func @transform_3(%arg0: i32) -> (i32, i32) {
    %c0_i32 = arith.constant 0 : i32
    %c0_i32_0 = arith.constant 0 : i32
    %c0_i32_1 = arith.constant 0 : i32
    return %c0_i32, %c0_i32_0 : i32, i32
  }
  func.func @transform_4(%arg0: i32) -> (i32, i32) {
    %c0_i32 = arith.constant 0 : i32
    %c0_i32_0 = arith.constant 0 : i32
    %c0_i32_1 = arith.constant 0 : i32
    return %c0_i32, %c0_i32_0 : i32, i32
  }
  func.func @transform_5(%arg0: i32) -> (i32, i32, i32) {
    %c0_i32 = arith.constant 0 : i32
    %c0_i32_0 = arith.constant 0 : i32
    %c0_i32_1 = arith.constant 0 : i32
    return %arg0, %c0_i32, %c0_i32_0 : i32, i32, i32
  }
}

</mosaic_0001>

<bundles_post_ra>
// kernel: msresnet_forward.6
= control target key start
LH: loop header
LB: loop body
LE: loop exit
PB: predicated region body
PF: predicated region fallthrough
CT: control target
= control target key end

     0   :  { %s964_s12 = smov 0   ;;  %s966_s13 = smov 0   ;;  %s1095_s0 = inlined_call_operand.vmem [shape: bf16[2,88,16], index: 0, kind: input, shape index: {}]   ;;  %s1096_s1 = inlined_call_operand.vmem [shape: bf16[2,2,16,8], index: 1, kind: input, shape index: {}]   ;;  %s1097_s2 = inlined_call_operand.vmem [shape: f32[1,8], index: 2, kind: input, shape index: {}]   ;;  %s1098_s3 = inlined_call_operand.vmem [shape: bf16[2,72,8], index: 3, kind: output, shape index: {}]  }
   0x1   :  { %s968_s14 = smov 0  }
   0x2 LB: > { %s25_s15 = sadd.s32 1, %s938_s13  ;;  %p799_p0 = scmp.ge.s32.totalorder %s942_s14, 1  ;;  %s942_s14 = sphi %s968_s14, %s13_s14   ;;  %s938_s13 = sphi %s966_s13, %s1100_s13   ;;  %s934_s12 = sphi %s964_s12, %s1099_s12  }
   0x3   : > { %p27_p1 = scmp.ge.s32.totalorder %s25_s15, 2  ;;  %p168_p2 = scmp.lt.s32.totalorder %s942_s14, 3 }
   0x5   : > { %s1102_s15 = smov (%p27_p1, %s25_s15), 0  ;;  %p169_p3 = pnand %p799_p0, %p168_p2 }
   0x6   : > { %p202_p4 = scmp.lt.s32.totalorder (!%p169_p3), %s934_s12, 1 }
   0x7   : > { %172 = sbr.rel (%p169_p3) target bundleno = 233 (0xe9), region = 32 }
   0xc   : > { %v882_v0 = vld [vmem:[%s1096_s1] sm:$0xff]  ;;  %v889_v1 = vld [vmem:[%s1096_s1 + $0x18] sm:$0xff]  ;;  %v883_v2 = vld [vmem:[%s1096_s1 + $0x8] sm:$0xff]  ;;  %s1104_s12 = smov (!%p202_p4, %s934_s12), 1  ;;  %vm309_vm0 = vcmask 130048   ;;  %vm556_vm1 = vcmask 1046528  }
   0xd   : > { %v888_v3 = vld [vmem:[%s1096_s1 + $0x10] sm:$0xff]  ;;  %383 = vmatpush.bf16.msra.mxu1 %v882_v0  ;;  %594 = vmatpush.bf16.msra.mxu3 %v889_v1  ;;  %s890_s24 = smul.u32 44, %s1104_s12  ;;  %vm263_vm2 = vsmask.f32 7424  ;;  %vm678_vm4 = vcmask 60416  }
   0xe   : > { %332 = vmatpush.bf16.msra.mxu0 %v883_v2  ;;  %514 = vmatpush.bf16.msra.mxu2 %v888_v3  ;;  %s891_s30 = smul.u32 36, %s1104_s12 }
   0xf   : > { %s1000_s27 = scalar_lea.vmem %s1095_s0, %s890_s24 }
  0x10   : > { %v878_v4 = vld [vmem:[%s1000_s27] sm:$0xff]  ;;  %v917_v6 = vld [vmem:[%s1000_s27 + $0x4] sm:$0xf0]  ;;  %v884_v7 = vld [vmem:[%s1000_s27 + $0xc] sm:$0xff]  ;;  %s1058_s6 = scalar_lea.vmem %s1098_s3, %s891_s30 }
  0x11   : > { %v410_v5 = vld [vmem:[%s1000_s27 + $0x4] sm:$0xff]   ;;  %v267_v10 = vshll.u32 %v878_v4, 16  ;;  %833 = vmatmul.msk.bf16.vlgmr.msra.gmra.mxu1 %vm309_vm0, %v878_v4  ;;  %v265_v11 = vshrl.u32 %v878_v4, 16  ;;  %v455_v13 = vshll.u32 %v884_v7, 16  ;;  %v558_v15 = vrot.slane %v884_v7, 1  ;;  %v880_v27 = vld [vmem:[%s1000_s27 + $0x10] sm:$0xff] }
  0x12   : > { %v918_v8 = vld [vmem:[%s1000_s27 + $0x4] sm:$0xe]  ;;  %v879_v9 = vld [vmem:[%s1000_s27 + $0x8] sm:$0xff]  ;;  %v448_v18 = vshrl.u32 %v410_v5, 16  ;;  %v450_v19 = vshll.u32 %v410_v5, 16  ;;  %v885_v29 = vld [vmem:[%s1000_s27 + $0x14] sm:$0xff] }
  0x13   : > { %v272_v12 = vshll.u32 %v879_v9, 16  ;;  %v919_v14 = vor.u32 %v918_v8, %v917_v6  ;;  %v269_v16 = vrot.slane %v267_v10, 1  ;;  %v457_v23 = vrot.slane %v455_v13, 1  ;;  %v881_v42 = vld [vmem:[%s1000_s27 + $0x18] sm:$0xff]  ;;  %v231_v51 = vld [vmem:[%s1000_s27 + $0x20] sm:$0xf] }
  0x14   : > { %v452_v22 = vrot.slane %v450_v19, 1  ;;  %v276_v30 = vshrl.u32 %v879_v9, 16  ;;  %v280_v31 = vshll.u32 %v880_v27, 16  ;;  %v459_v32 = vshrl.u32 %v884_v7, 16  ;;  %v886_v43 = vld [vmem:[%s1000_s27 + $0x1c] sm:$0xff] }
  0x15   : > { %v274_v17 = vrot.slane %v272_v12, 1  ;;  %v557_v20 = vrot.slane %v919_v14, 1  ;;  %v270_v21 = vor.u32 %v269_v16, %v265_v11  ;;  %v463_v33 = vshll.u32 %v885_v29, 16  ;;  %v234_v52 = vld [vmem:[%s1000_s27 + $0x24] sm:$0x1] }
  0x16   : > { %v453_v26 = vor.u32 %v452_v22, %v448_v18  ;;  %v560_v34 = vrot.slane %v885_v29, 1  ;;  %v282_v36 = vrot.slane %v280_v31, 1  ;;  %v461_v37 = vor.u32 %v459_v32, %v457_v23  ;;  %v854_v61 = vld [vmem:[%s1000_s27 + $0x24] sm:$0xf]  ;;  %v887_v62 = vld [vmem:[%s1000_s27 + $0x24] sm:$0x10] }
  0x17   : > { %v559_v24 = vsel %vm556_vm1, %v557_v20, %v558_v15  ;;  %v275_v25 = vsel %vm263_vm2, %v270_v21, %v274_v17  ;;  %v278_v35 = vor.u32 %v276_v30, %v274_v17  ;;  %v465_v38 = vrot.slane %v463_v33, 1 }
  0x18   : > { %871 = vmatmul.msk.bf16.vlgmr.msra.gmra.mxu3 %vm309_vm0, %v559_v24  ;;  %824 = vmatmul.msk.bf16.vlgmr.msra.gmra.mxu0 %vm309_vm0, %v275_v25  ;;  %v458_v28 = vsel %vm263_vm2, %v453_v26, %v457_v23  ;;  %v561_v39 = vsel %vm556_vm1, %v558_v15, %v560_v34  ;;  %v284_v44 = vshrl.u32 %v880_v27, 16  ;;  %v288_v45 = vshll.u32 %v881_v42, 16  ;;  %v1051_v26 = vld [vmem:[%s1097_s2] ss:$0 sm:$0xff] }
  0x19   : > { %860 = vmatmul.msk.bf16.vlgmr.msra.gmra.mxu2 %vm309_vm0, %v458_v28  ;;  %v283_v40 = vsel %vm263_vm2, %v278_v35, %v282_v36  ;;  %v466_v41 = vsel %vm263_vm2, %v461_v37, %v465_v38  ;;  %v467_v46 = vshrl.u32 %v885_v29, 16  ;;  %v471_v47 = vshll.u32 %v886_v43, 16 }
  0x1a   : > { %v562_v48 = vrot.slane %v886_v43, 1  ;;  %v286_v49 = vor.u32 %v284_v44, %v282_v36  ;;  %v290_v50 = vrot.slane %v288_v45, 1  ;;  %v256_v57 = vunpack.c.l.b16 %v231_v51 }
  0x1b   : > { %v469_v53 = vor.u32 %v467_v46, %v465_v38  ;;  %v473_v54 = vrot.slane %v471_v47, 1  ;;  %v257_v58 = vunpack.c.l.b16 %v234_v52  ;;  %v855_v63 = vor.u32 %v887_v62, %v854_v61 }
  0x1c   : > { %v563_v55 = vsel %vm556_vm1, %v560_v34, %v562_v48  ;;  %v291_v56 = vsel %vm263_vm2, %v286_v49, %v290_v50  ;;  %v292_v0 = vshrl.u32 %v881_v42, 16  ;;  %v475_v2 = vshrl.u32 %v886_v43, 16 }
  0x1d   : > { %v474_v59 = vsel %vm263_vm2, %v469_v53, %v473_v54  ;;  %v262_v60 = vpack.c.b16 %v257_v58, %v256_v57  ;;  %v479_v3 = vshll.u32 %v855_v63, 16  ;;  %v564_v4 = vrot.slane %v855_v63, 1 }
  0x1e   : > { %v294_v5 = vor.u32 %v292_v0, %v290_v50  ;;  %v477_v7 = vor.u32 %v475_v2, %v473_v54  ;;  %v358_v12 = vpack.c.b16 %v256_v57, %v256_v57  ;;  %v483_v14 = vshrl.u32 %v855_v63, 16 }
  0x1f   : > { %v296_v1 = vshll.u32 %v262_v60, 16  ;;  %v481_v8 = vrot.slane %v479_v3, 1  ;;  %v300_v13 = vshrl.u32 %v262_v60, 16 }
  0x21   : > { %834 = vmatmul.msk.bf16.gmra.mxu1 %vm309_vm0, %v879_v9  ;;  %v298_v6 = vrot.slane %v296_v1, 1  ;;  %v565_v9 = vsel %vm556_vm1, %v562_v48, %v564_v4  ;;  %v482_v11 = vsel %vm263_vm2, %v477_v7, %v481_v8  ;;  %v485_v16 = vor.u32 %v483_v14, %v481_v8 }
  0x23   : > { %v299_v10 = vsel %vm263_vm2, %v294_v5, %v298_v6  ;;  %v302_v15 = vor.u32 %v300_v13, %v298_v6 }
  0x28   : > { %872 = vmatmul.msk.bf16.gmra.mxu3 %vm309_vm0, %v561_v39  ;;  %825 = vmatmul.msk.bf16.gmra.mxu0 %vm309_vm0, %v283_v40 }
  0x29   : > { %861 = vmatmul.msk.bf16.gmra.mxu2 %vm309_vm0, %v466_v41 }
  0x31   : > { %835 = vmatmul.msk.bf16.gmra.mxu1 %vm309_vm0, %v880_v27 }
  0x38   : > { %873 = vmatmul.msk.bf16.gmra.mxu3 %vm309_vm0, %v563_v55  ;;  %826 = vmatmul.msk.bf16.gmra.mxu0 %vm309_vm0, %v291_v56 }
  0x39   : > { %862 = vmatmul.msk.bf16.gmra.mxu2 %vm309_vm0, %v474_v59 }
  0x41   : > { %836 = vmatmul.msk.bf16.gmra.mxu1 %vm309_vm0, %v881_v42 }
  0x48   : > { %874 = vmatmul.msk.bf16.gmra.mxu3 %vm309_vm0, %v565_v9  ;;  %827 = vmatmul.msk.bf16.gmra.mxu0 %vm309_vm0, %v299_v10 }
  0x49   : > { %863 = vmatmul.msk.bf16.gmra.mxu2 %vm309_vm0, %v482_v11 }
  0x51   : > { %837 = vmatmul.msk.bf16.gmra.mxu1 %vm309_vm0, %v358_v12 }
  0x58   : > { %875 = vmatmul.msk.bf16.gmra.mxu3 %vm309_vm0, %v564_v4  ;;  %828 = vmatmul.msk.bf16.gmra.mxu0 %vm309_vm0, %v302_v15 }
  0x59   : > { %864 = vmatmul.msk.bf16.gmra.mxu2 %vm309_vm0, %v485_v16 }
  0x8e   : > { %v385_v17 = vpop.f32.mrf.mxu1 }
  0x95   : > { %v334_v18 = vpop.f32.mrf.mxu0 }
  0x96   : > { %v387_v19 = vpop.f32.mrf.mxu1  ;;  %v386_v20 = vadd.f32 %v385_v17, %v334_v18 }
  0x9b   : > { %v596_v21 = vpop.f32.mrf.mxu3 }
  0x9c   : > { %v516_v23 = vpop.f32.mrf.mxu2 }
  0x9d   : > { %v336_v22 = vpop.f32.mrf.mxu0  ;;  %v540_v25 = vadd.f32 %v516_v23, %v386_v20 }
  0x9e   : > { %v390_v24 = vpop.f32.mrf.mxu1  ;;  %v388_v30 = vadd.f32 %v387_v19, %v336_v22 }
  0x9f   : > { %v620_v27 = vadd.f32 %v596_v21, %v540_v25 }
  0xa1   : > { %v633_v28 = vadd.f32 %v1051_v26, %v620_v27 }
  0xa3   : > { %v598_v29 = vpop.f32.mrf.mxu3  ;;  %vm642_vm3 = vcmp.ge.f32.partialorder %v633_v28, 0.0  ;;  %v651_v31 = vmul.f32 0.2, %v633_v28 }
  0xa4   : > { %v518_v33 = vpop.f32.mrf.mxu2 }
  0xa5   : > { %v339_v32 = vpop.f32.mrf.mxu0  ;;  %v660_v35 = vsel %vm642_vm3, %v633_v28, %v651_v31  ;;  %v541_v36 = vadd.f32 %v518_v33, %v388_v30 }
  0xa6   : > { %v392_v34 = vpop.f32.mrf.mxu1  ;;  %v669_v37 = vpack.c.bf16 %v660_v35, %v660_v35  ;;  %v391_v39 = vadd.f32 %v390_v24, %v339_v32 }
  0xa7   : > { %v621_v38 = vadd.f32 %v598_v29, %v541_v36 }
  0xa8   : > { %679 = vst.msk [vmem:[%s1058_s6] sm:$0xf] %vm678_vm4, %v669_v37 }
  0xa9   : > { %v634_v40 = vadd.f32 %v1051_v26, %v621_v38 }
  0xab   : > { %v601_v41 = vpop.f32.mrf.mxu3  ;;  %vm643_vm5 = vcmp.ge.f32.partialorder %v634_v40, 0.0  ;;  %v652_v42 = vmul.f32 0.2, %v634_v40 }
  0xac   : > { %v521_v44 = vpop.f32.mrf.mxu2 }
  0xad   : > { %v341_v43 = vpop.f32.mrf.mxu0  ;;  %v661_v46 = vsel %vm643_vm5, %v634_v40, %v652_v42  ;;  %v542_v47 = vadd.f32 %v521_v44, %v391_v39 }
  0xae   : > { %v395_v45 = vpop.f32.mrf.mxu1  ;;  %v670_v48 = vpack.c.bf16 %v661_v46, %v661_v46  ;;  %v393_v52 = vadd.f32 %v392_v34, %v341_v43 }
  0xaf   : > { %v622_v49 = vadd.f32 %v601_v41, %v542_v47 }
  0xb0   : > { %680 = vst.msk [vmem:[%s1058_s6 + $0x4] sm:$0xf] %vm678_vm4, %v670_v48 }
  0xb1   : > { %v635_v50 = vadd.f32 %v1051_v26, %v622_v49 }
  0xb3   : > { %v603_v51 = vpop.f32.mrf.mxu3  ;;  %vm644_vm6 = vcmp.ge.f32.partialorder %v635_v50, 0.0  ;;  %v653_v53 = vmul.f32 0.2, %v635_v50 }
  0xb4   : > { %v523_v55 = vpop.f32.mrf.mxu2 }
  0xb5   : > { %v344_v54 = vpop.f32.mrf.mxu0  ;;  %v662_v57 = vsel %vm644_vm6, %v635_v50, %v653_v53  ;;  %v543_v58 = vadd.f32 %v523_v55, %v393_v52 }
  0xb6   : > { %v397_v56 = vpop.f32.mrf.mxu1  ;;  %v671_v59 = vpack.c.bf16 %v662_v57, %v662_v57  ;;  %v396_v61 = vadd.f32 %v395_v45, %v344_v54 }
  0xb7   : > { %v623_v60 = vadd.f32 %v603_v51, %v543_v58 }
  0xb8   : > { %681 = vst.msk [vmem:[%s1058_s6 + $0x8] sm:$0xf] %vm678_vm4, %v671_v59 }
  0xb9   : > { %v636_v62 = vadd.f32 %v1051_v26, %v623_v60 }
  0xbb   : > { %v606_v63 = vpop.f32.mrf.mxu3  ;;  %vm645_vm7 = vcmp.ge.f32.partialorder %v636_v62, 0.0  ;;  %v654_v0 = vmul.f32 0.2, %v636_v62 }
  0xbc   : > { %v526_v2 = vpop.f32.mrf.mxu2 }
  0xbd   : > { %v346_v1 = vpop.f32.mrf.mxu0  ;;  %v663_v4 = vsel %vm645_vm7, %v636_v62, %v654_v0  ;;  %v544_v5 = vadd.f32 %v526_v2, %v396_v61 }
  0xbe   : > { %v400_v3 = vpop.f32.mrf.mxu1  ;;  %v672_v6 = vpack.c.bf16 %v663_v4, %v663_v4  ;;  %v398_v10 = vadd.f32 %v397_v56, %v346_v1 }
  0xbf   : > { %v624_v7 = vadd.f32 %v606_v63, %v544_v5 }
  0xc0   : > { %682 = vst.msk [vmem:[%s1058_s6 + $0xc] sm:$0xf] %vm678_vm4, %v672_v6 }
  0xc1   : > { %v637_v8 = vadd.f32 %v1051_v26, %v624_v7 }
  0xc3   : > { %v608_v9 = vpop.f32.mrf.mxu3  ;;  %vm646_vm8 = vcmp.ge.f32.partialorder %v637_v8, 0.0  ;;  %v655_v11 = vmul.f32 0.2, %v637_v8 }
  0xc4   : > { %v528_v13 = vpop.f32.mrf.mxu2 }
  0xc5   : > { %v349_v12 = vpop.f32.mrf.mxu0  ;;  %v664_v15 = vsel %vm646_vm8, %v637_v8, %v655_v11  ;;  %v545_v16 = vadd.f32 %v528_v13, %v398_v10 }
  0xc6   : > { %v402_v14 = vpop.f32.mrf.mxu1  ;;  %v673_v17 = vpack.c.bf16 %v664_v15, %v664_v15  ;;  %v401_v19 = vadd.f32 %v400_v3, %v349_v12 }
  0xc7   : > { %v625_v18 = vadd.f32 %v608_v9, %v545_v16 }
  0xc8   : > { %683 = vst.msk [vmem:[%s1058_s6 + $0x10] sm:$0xf] %vm678_vm4, %v673_v17 }
  0xc9   : > { %v638_v20 = vadd.f32 %v1051_v26, %v625_v18 }
  0xcb   : > { %v611_v21 = vpop.f32.mrf.mxu3  ;;  %vm647_vm9 = vcmp.ge.f32.partialorder %v638_v20, 0.0  ;;  %v656_v22 = vmul.f32 0.2, %v638_v20 }
  0xcc   : > { %v531_v24 = vpop.f32.mrf.mxu2 }
  0xcd   : > { %v351_v23 = vpop.f32.mrf.mxu0  ;;  %v665_v27 = vsel %vm647_vm9, %v638_v20, %v656_v22  ;;  %v546_v28 = vadd.f32 %v531_v24, %v401_v19 }
  0xce   : > { %v405_v25 = vpop.f32.mrf.mxu1  ;;  %v674_v29 = vpack.c.bf16 %v665_v27, %v665_v27  ;;  %v403_v33 = vadd.f32 %v402_v14, %v351_v23 }
  0xcf   : > { %v626_v30 = vadd.f32 %v611_v21, %v546_v28 }
  0xd0   : > { %684 = vst.msk [vmem:[%s1058_s6 + $0x14] sm:$0xf] %vm678_vm4, %v674_v29 }
  0xd1   : > { %v639_v31 = vadd.f32 %v1051_v26, %v626_v30 }
  0xd3   : > { %v613_v32 = vpop.f32.mrf.mxu3  ;;  %vm648_vm10 = vcmp.ge.f32.partialorder %v639_v31, 0.0  ;;  %v657_v34 = vmul.f32 0.2, %v639_v31 }
  0xd4   : > { %v533_v36 = vpop.f32.mrf.mxu2 }
  0xd5   : > { %v354_v35 = vpop.f32.mrf.mxu0  ;;  %v666_v38 = vsel %vm648_vm10, %v639_v31, %v657_v34  ;;  %v547_v39 = vadd.f32 %v533_v36, %v403_v33 }
  0xd6   : > { %v407_v37 = vpop.f32.mrf.mxu1  ;;  %v675_v40 = vpack.c.bf16 %v666_v38, %v666_v38  ;;  %v406_v42 = vadd.f32 %v405_v25, %v354_v35 }
  0xd7   : > { %v627_v41 = vadd.f32 %v613_v32, %v547_v39 }
  0xd8   : > { %685 = vst.msk [vmem:[%s1058_s6 + $0x18] sm:$0xf] %vm678_vm4, %v675_v40 }
  0xd9   : > { %v640_v43 = vadd.f32 %v1051_v26, %v627_v41 }
  0xdb   : > { %v616_v44 = vpop.f32.mrf.mxu3  ;;  %vm649_vm11 = vcmp.ge.f32.partialorder %v640_v43, 0.0  ;;  %v658_v45 = vmul.f32 0.2, %v640_v43 }
  0xdc   : > { %v536_v47 = vpop.f32.mrf.mxu2 }
  0xdd   : > { %v356_v46 = vpop.f32.mrf.mxu0  ;;  %v667_v48 = vsel %vm649_vm11, %v640_v43, %v658_v45  ;;  %v548_v49 = vadd.f32 %v536_v47, %v406_v42 }
  0xde   : > { %v676_v50 = vpack.c.bf16 %v667_v48, %v667_v48 }
  0xdf   : > { %v628_v51 = vadd.f32 %v616_v44, %v548_v49 }
  0xe0   : > { %686 = vst.msk [vmem:[%s1058_s6 + $0x1c] sm:$0xf] %vm678_vm4, %v676_v50 }
  0xe1   : > { %v641_v52 = vadd.f32 %v1051_v26, %v628_v51 }
  0xe3   : > { %v618_v53 = vpop.f32.mrf.mxu3  ;;  %vm650_vm12 = vcmp.ge.f32.partialorder %v641_v52, 0.0  ;;  %v659_v54 = vmul.f32 0.2, %v641_v52 }
  0xe4   : > { %v538_v55 = vpop.f32.mrf.mxu2 }
  0xe5   : > { %v668_v56 = vsel %vm650_vm12, %v641_v52, %v659_v54 }
  0xe6   : > { %v677_v57 = vpack.c.bf16 %v668_v56, %v668_v56 }
  0xe8   : > { %687 = vst.msk [vmem:[%s1058_s6 + $0x20] sm:$0xf] %vm678_vm4, %v677_v57 }
  0xe9 PF: > { %s13_s14 = sadd.s32 1, %s942_s14   ;;  %s1099_s12 = smov %s938_s13 }
  0xea   : > { %p10_p5 = scmp.ge.s32.totalorder %s13_s14, 4   ;;  %s1100_s13 = smov %s1102_s15 }
  0xec   :  { %12 = sbr.rel (!%p10_p5) target bundleno = 2 (0x2), region = 71 }

// kernel: msresnet_forward.7
= control target key start
LH: loop header
LB: loop body
LE: loop exit
PB: predicated region body
PF: predicated region fallthrough
CT: control target
= control target key end

     0   :  { %s720_s18 = smov 0   ;;  %s793_s0 = inlined_call_operand.vmem [shape: bf16[2,32,32], index: 0, kind: input, shape index: {}]   ;;  %s794_s1 = inlined_call_operand.vmem [shape: bf16[2,2,32,16], index: 1, kind: input, shape index: {}]   ;;  %s795_s2 = inlined_call_operand.vmem [shape: f32[1,16], index: 2, kind: input, shape index: {}]   ;;  %s796_s3 = inlined_call_operand.vmem [shape: bf16[16,2], index: 3, kind: input, shape index: {}]   ;;  %s797_s4 = inlined_call_operand.vmem [shape: f32[1,2], index: 4, kind: input, shape index: {}]   ;;  %s798_s5 = inlined_call_operand.vmem [shape: f32[2,20,2], index: 5, kind: output, shape index: {}]  }
   0x1 LB: > { %s581_s19 = sadd.s32 4294967295, %s688_s18   ;;  %p585_p0 = scmp.ge.s32.totalorder %s688_s18, 1  ;;  %s688_s18 = sphi %s720_s18, %s15_s18  }
   0x2   : > { %p187_p1 = scmp.lt.s32.totalorder %s688_s18, 3 }
   0x4   : > { %p188_p2 = pnand %p585_p0, %p187_p1 }
   0x5   : > { %p215_p3 = scmp.lt.s32.totalorder (!%p188_p2), %s581_s19, 1 }
   0x6   : > { %191 = sbr.rel (%p188_p2) target bundleno = 338 (0x152), region = 40 }
   0xb   : > { %v662_v0 = vld [vmem:[%s794_s1 + $0x18] sm:$0xff]  ;;  %v665_v1 = vld [vmem:[%s794_s1 + $0x28] sm:$0xff]  ;;  %v661_v3 = vld [vmem:[%s794_s1 + $0x10] sm:$0xff]  ;;  %s800_s19 = smov (!%p215_p3, %s581_s19), 1  ;;  %vm423_vm0 = vcmask 1044480   ;;  %vm275_vm1 = vcmask 261120  }
   0xc   : > { %v667_v2 = vld [vmem:[%s794_s1 + $0x38] sm:$0xff]  ;;  %669 = vmatpush.bf16.msra.mxu1 %v662_v0  ;;  %399 = vmatpush.bf16.msra.mxu2 %v665_v1  ;;  %v660_v4 = vld [vmem:[%s794_s1 + $0x8] sm:$0xff]  ;;  %v664_v5 = vld [vmem:[%s794_s1 + $0x20] sm:$0xff]  ;;  %s657_s9 = sshll.u32 %s800_s19, 4  ;;  %vm357_vm2 = vsmask.f32 5376 }
   0xd   : > { %451 = vmatpush.bf16.msra.mxu3 %v667_v2  ;;  %288 = vmatpush.bf16.msra.mxu0 %v662_v0  ;;  %v666_v6 = vld [vmem:[%s794_s1 + $0x30] sm:$0xff]  ;;  %s755_s12 = scalar_lea.vmem %s793_s0, %s657_s9  ;;  %v659_v7 = vld [vmem:[%s794_s1] sm:$0xff]  ;;  %vm247_vm3 = vsmask.f32 7424  ;;  %vm496_vm6 = vcmask 130048   ;;  %s671_s21 = smul.u32 24, %s800_s19 }
   0xe   : > { %v233_v8 = vld [vmem:[%s755_s12 + $0x8] sm:$0x7]  ;;  %v338_v9 = vld [vmem:[%s755_s12] sm:$0xc]  ;;  %v339_v10 = vld [vmem:[%s755_s12 + $0x4] sm:$0xf] }
   0xf   : > { %v244_v11 = vunpack.c.l.b16 %v233_v8  ;;  %v623_v12 = vld [vmem:[%s755_s12 + $0x8] sm:$0xf]  ;;  %v663_v13 = vld [vmem:[%s755_s12 + $0x8] sm:$0x10]  ;;  %v351_v14 = vunpack.c.l.b16 %v338_v9  ;;  %v352_v15 = vunpack.c.l.b16 %v339_v10  ;;  %v414_v16 = vld [vmem:[%s755_s12] sm:$0x8]  ;;  %s224_s26 = scalar_lea.vmem %s798_s5, %s671_s21 }
  0x10   : > { %670 = vmatpush.bf16.msra.mxu1 %v661_v3  ;;  %400 = vmatpush.bf16.msra.mxu2 %v664_v5  ;;  %v624_v17 = vor.u32 %v663_v13, %v623_v12  ;;  %v421_v18 = vunpack.c.l.b16 %v414_v16  ;;  %v658_v21 = vld [vmem:[%s755_s12] sm:$0xff]  ;;  %v228_v46 = vld [vmem:[%s755_s12 + $0x8] sm:$0x3]  ;;  %vm521_vm8 = vcmask 15360   ;;  %vm524_vm9 = vcmask 11264  }
  0x11   : > { %452 = vmatpush.bf16.msra.mxu3 %v666_v6  ;;  %289 = vmatpush.bf16.msra.mxu0 %v661_v3  ;;  %v246_v19 = vpack.c.b16 %v244_v11, %v244_v11  ;;  %v355_v20 = vpack.c.b16 %v352_v15, %v351_v14  ;;  %v249_v33 = vshrl.u32 %v658_v21, 16  ;;  %v251_v37 = vshll.u32 %v658_v21, 16  ;;  %v668_v49 = vld [vmem:[%s796_s3] sm:$0xff] }
  0x12   : > { %v367_v22 = vshrl.u32 %v624_v17, 16  ;;  %v370_v23 = vshll.u32 %v624_v17, 16  ;;  %v422_v24 = vpack.c.b16 %v352_v15, %v421_v18  ;;  %v425_v25 = vrot.slane %v624_v17, 3  ;;  %v680_v62 = vld [vmem:[%s795_s2] ss:$0 sm:$0xff] }
  0x13   : > { %v256_v26 = vshll.u32 %v246_v19, 16  ;;  %v260_v27 = vshrl.u32 %v246_v19, 16  ;;  %v359_v28 = vshrl.u32 %v355_v20, 16  ;;  %v362_v29 = vshll.u32 %v355_v20, 16 }
  0x14   : > { %326 = vmatpush.bf16.msrb.mxu1 %v660_v4  ;;  %v369_v30 = vrot.slane %v367_v22, 2  ;;  %v372_v31 = vrot.slane %v370_v23, 3  ;;  %v424_v32 = vrot.slane %v422_v24, 3  ;;  %v253_v42 = vrot.slane %v251_v37, 1  ;;  %v681_v23 = vld [vmem:[%s797_s4] ss:$0 sm:$0xff] }
  0x15   : > { %v258_v34 = vrot.slane %v256_v26, 1  ;;  %v361_v35 = vrot.slane %v359_v28, 2  ;;  %v364_v36 = vrot.slane %v362_v29, 3  ;;  %v301_v47 = vunpack.c.l.b16 %v228_v46  ;;  %510 = vmatpush.bf16.msrb.mxu0 %v668_v49 }
  0x16   : > { %v373_v38 = vor.u32 %v372_v31, %v369_v30  ;;  %v426_v39 = vsel %vm423_vm0, %v424_v32, %v425_v25  ;;  %v254_v44 = vor.u32 %v253_v42, %v249_v33 }
  0x17   : > { %v262_v40 = vor.u32 %v260_v27, %v258_v34  ;;  %v365_v41 = vor.u32 %v364_v36, %v361_v35  ;;  %647 = vmatmul.msk.bf16.vlgmr.msra.gmra.mxu3 %vm275_vm1, %v426_v39  ;;  %v302_v48 = vpack.c.b16 %v301_v47, %v301_v47 }
  0x18   : > { %327 = vmatpush.bf16.msrb.mxu1 %v659_v7  ;;  %v259_v45 = vsel %vm247_vm3, %v254_v44, %v258_v34 }
  0x19   : > { %606 = vmatmul.msk.bf16.vlgmr.msra.gmra.mxu1 %vm275_vm1, %v262_v40  ;;  %v374_v43 = vsel %vm357_vm2, %v365_v41, %v373_v38  ;;  %605 = vmatmul.msk.bf16.vlgmr.msra.gmra.mxu0 %vm275_vm1, %v259_v45 }
  0x1a   : > { %633 = vmatmul.msk.bf16.vlgmr.msra.gmra.mxu2 %vm275_vm1, %v374_v43 }
  0x27   : > { %648 = vmatmul.msk.bf16.gmra.mxu3 %vm275_vm1, %v425_v25 }
  0x29   : > { %615 = vmatmul.msk.bf16.vlgmr.msrb.gmra.mxu1 %vm275_vm1, %v658_v21 }
  0x2a   : > { %634 = vmatmul.msk.bf16.gmra.mxu2 %vm275_vm1, %v373_v38 }
  0x39   : > { %616 = vmatmul.msk.bf16.gmra.mxu1 %vm275_vm1, %v302_v48 }
  0x96   : > { %v296_v50 = vpop.f32.mrf.mxu1  ;;  %v291_v55 = vpop.f32.mrf.mxu0 }
  0x9a   : > { %v454_v51 = vpop.f32.mrf.mxu3 }
  0x9d   : > { %v402_v52 = vpop.f32.mrf.mxu2 }
  0x9e   : > { %v298_v53 = vpop.f32.mrf.mxu1  ;;  %v293_v0 = vpop.f32.mrf.mxu0 }
  0xa2   : > { %v456_v54 = vpop.f32.mrf.mxu3 }
  0xa5   : > { %v404_v56 = vpop.f32.mrf.mxu2 }
  0xa6   : > { %v329_v57 = vpop.f32.mrf.mxu1 }
  0xa7   : > { %v330_v58 = vadd.f32 %v329_v57, %v291_v55 }
  0xa9   : > { %v411_v59 = vadd.f32 %v402_v52, %v330_v58 }
  0xaa   : > { %v459_v60 = vpop.f32.mrf.mxu3 }
  0xab   : > { %v463_v61 = vadd.f32 %v454_v51, %v411_v59 }
  0xad   : > { %v407_v63 = vpop.f32.mrf.mxu2  ;;  %v470_v3 = vadd.f32 %v680_v62, %v463_v61 }
  0xae   : > { %v331_v1 = vpop.f32.mrf.mxu1 }
  0xaf   : > { %v332_v2 = vadd.f32 %v331_v1, %v293_v0  ;;  %v476_v7 = vmul.f32 0.2, %v470_v3  ;;  %vm473_vm4 = vcmp.ge.f32.partialorder %v470_v3, 0.0 }
  0xb1   : > { %v412_v4 = vadd.f32 %v404_v56, %v332_v2  ;;  %v479_v14 = vsel %vm473_vm4, %v470_v3, %v476_v7 }
  0xb2   : > { %v461_v5 = vpop.f32.mrf.mxu3 }
  0xb3   : > { %v464_v6 = vadd.f32 %v456_v54, %v412_v4 }
  0xb5   : > { %v471_v8 = vadd.f32 %v680_v62, %v464_v6  ;;  %v409_v9 = vpop.f32.mrf.mxu2 }
  0xb6   : > { %v334_v10 = vpop.f32.mrf.mxu1 }
  0xb7   : > { %v477_v11 = vmul.f32 0.2, %v471_v8  ;;  %v335_v12 = vadd.f32 %v334_v10, %v296_v50  ;;  %vm474_vm5 = vcmp.ge.f32.partialorder %v471_v8, 0.0 }
  0xb9   : > { %v413_v13 = vadd.f32 %v407_v63, %v335_v12  ;;  %v480_v15 = vsel %vm474_vm5, %v471_v8, %v477_v11 }
  0xba   : > { %v482_v16 = vpack.c.bf16 %v480_v15, %v479_v14 }
  0xbb   : > { %v465_v17 = vadd.f32 %v459_v60, %v413_v13 }
  0xbc   : > { %653 = vmatmul.msk.bf16.vlgmr.msrb.gmra.mxu0 %vm496_vm6, %v482_v16 }
  0xbd   : > { %v472_v19 = vadd.f32 %v680_v62, %v465_v17 }
  0xbe   : > { %v336_v18 = vpop.f32.mrf.mxu1 }
  0xbf   : > { %v478_v20 = vmul.f32 0.2, %v472_v19  ;;  %vm475_vm7 = vcmp.ge.f32.partialorder %v472_v19, 0.0 }
  0xc1   : > { %v481_v21 = vsel %vm475_vm7, %v472_v19, %v478_v20 }
  0xc2   : > { %v483_v22 = vpack.c.bf16 %v481_v21, %v481_v21 }
  0xcc   : > { %654 = vmatmul.msk.bf16.gmra.mxu0 %vm496_vm6, %v483_v22 }
 0x139   : > { %v512_v24 = vpop.f32.mrf.mxu0 }
 0x13a   : > { %v513_v25 = vadd.f32 %v681_v23, %v512_v24 }
 0x13c   : > { %522 = vst.msk [vmem:[%s224_s26] sm:$0xff] %vm521_vm8, %v513_v25 }
 0x141   : > { %v514_v26 = vpop.f32.mrf.mxu0 }
 0x142   : > { %v515_v27 = vadd.f32 %v681_v23, %v514_v26 }
 0x144   : > { %523 = vst.msk [vmem:[%s224_s26 + $0x8] sm:$0xff] %vm521_vm8, %v515_v27 }
 0x149   : > { %v517_v28 = vpop.f32.mrf.mxu0 }
 0x14a   : > { %v518_v29 = vadd.f32 %v681_v23, %v517_v28 }
 0x14c   : > { %525 = vst.msk [vmem:[%s224_s26 + $0x10] sm:$0xf] %vm524_vm9, %v518_v29 }
 0x151   : > { %v519_v30 = vpop.f32.mrf.mxu0 }
 0x152 PF: > { %s15_s18 = sadd.s32 1, %s688_s18  }
 0x153   : > { %p12_p4 = scmp.ge.s32.totalorder %s15_s18, 4  }
 0x155   :  { %14 = sbr.rel (!%p12_p4) target bundleno = 1 (0x1), region = 73 }

// kernel: msresnet_forward.8
= control target key start
LH: loop header
LB: loop body
LE: loop exit
PB: predicated region body
PF: predicated region fallthrough
CT: control target
= control target key end

     0   :  { %s687_s12 = smov 0   ;;  %s689_s13 = smov 0   ;;  %s759_s0 = inlined_call_operand.vmem [shape: bf16[2,32,16], index: 0, kind: input, shape index: {}]   ;;  %s760_s1 = inlined_call_operand.vmem [shape: bf16[2,2,16,8], index: 1, kind: input, shape index: {}]   ;;  %s761_s2 = inlined_call_operand.vmem [shape: f32[1,8], index: 2, kind: input, shape index: {}]   ;;  %s762_s3 = inlined_call_operand.vmem [shape: bf16[2,20,8], index: 3, kind: output, shape index: {}]  }
   0x1   :  { %s691_s14 = smov 0  }
   0x2 LB: > { %s25_s15 = sadd.s32 1, %s661_s13  ;;  %p566_p0 = scmp.ge.s32.totalorder %s665_s14, 1  ;;  %s665_s14 = sphi %s691_s14, %s13_s14   ;;  %s661_s13 = sphi %s689_s13, %s764_s13   ;;  %s657_s12 = sphi %s687_s12, %s763_s12  }
   0x3   : > { %p27_p1 = scmp.ge.s32.totalorder %s25_s15, 2  ;;  %p168_p2 = scmp.lt.s32.totalorder %s665_s14, 3 }
   0x5   : > { %s766_s15 = smov (%p27_p1, %s25_s15), 0  ;;  %p169_p3 = pnand %p566_p0, %p168_p2 }
   0x6   : > { %p202_p4 = scmp.lt.s32.totalorder (!%p169_p3), %s657_s12, 1 }
   0x7   : > { %172 = sbr.rel (%p169_p3) target bundleno = 189 (0xbd), region = 32 }
   0xc   : > { %v612_v0 = vld [vmem:[%s760_s1] sm:$0xff]  ;;  %v616_v1 = vld [vmem:[%s760_s1 + $0x18] sm:$0xff]  ;;  %v613_v2 = vld [vmem:[%s760_s1 + $0x8] sm:$0xff]  ;;  %s768_s12 = smov (!%p202_p4, %s657_s12), 1  ;;  %vm262_vm0 = vcmask 130048   ;;  %vm394_vm1 = vcmask 1044480  }
   0xd   : > { %v615_v3 = vld [vmem:[%s760_s1 + $0x10] sm:$0xff]  ;;  %308 = vmatpush.bf16.msra.mxu1 %v612_v0  ;;  %417 = vmatpush.bf16.msra.mxu3 %v616_v1  ;;  %s610_s24 = sshll.u32 %s768_s12, 4  ;;  %vm240_vm2 = vsmask.f32 7424  ;;  %vm336_vm3 = vsmask.f32 5376 }
   0xe   : > { %276 = vmatpush.bf16.msra.mxu0 %v613_v2  ;;  %373 = vmatpush.bf16.msra.mxu2 %v615_v3  ;;  %s723_s27 = scalar_lea.vmem %s759_s0, %s610_s24  ;;  %v642_v54 = vld [vmem:[%s761_s2] ss:$0 sm:$0xff]  ;;  %s617_s30 = smul.u32 12, %s768_s12  ;;  %vm450_vm5 = vcmask 60416   ;;  %vm453_vm8 = vcmask 58368  }
   0xf   : > { %v611_v4 = vld [vmem:[%s723_s27] sm:$0xff]  ;;  %v592_v6 = vld [vmem:[%s723_s27 + $0x8] sm:$0xf]  ;;  %v614_v7 = vld [vmem:[%s723_s27 + $0x8] sm:$0x10] }
  0x10   : > { %v320_v5 = vld [vmem:[%s723_s27 + $0x4] sm:$0xf]  ;;  %v387_v9 = vld [vmem:[%s723_s27] sm:$0x8]  ;;  %v228_v10 = vld [vmem:[%s723_s27 + $0x8] sm:$0x7]  ;;  %586 = vmatmul.msk.bf16.vlgmr.msra.gmra.mxu1 %vm262_vm0, %v611_v4  ;;  %v593_v12 = vor.u32 %v614_v7, %v592_v6  ;;  %s221_s6 = scalar_lea.vmem %s762_s3, %s617_s30 }
  0x11   : > { %v331_v8 = vunpack.c.l.b16 %v320_v5  ;;  %v244_v11 = vshll.u32 %v611_v4, 16  ;;  %v392_v13 = vunpack.c.l.b16 %v387_v9  ;;  %v237_v14 = vunpack.c.l.b16 %v228_v10  ;;  %v319_v15 = vld [vmem:[%s723_s27] sm:$0xc]  ;;  %v225_v32 = vld [vmem:[%s723_s27 + $0x8] sm:$0x3] }
  0x12   : > { %v242_v16 = vshrl.u32 %v611_v4, 16  ;;  %v330_v17 = vunpack.c.l.b16 %v319_v15  ;;  %v396_v19 = vrot.slane %v593_v12, 3  ;;  %v346_v23 = vshrl.u32 %v593_v12, 16 }
  0x13   : > { %v393_v18 = vpack.c.b16 %v331_v8, %v392_v13  ;;  %v239_v20 = vpack.c.b16 %v237_v14, %v237_v14  ;;  %v246_v21 = vrot.slane %v244_v11, 1  ;;  %v349_v24 = vshll.u32 %v593_v12, 16 }
  0x14   : > { %v334_v22 = vpack.c.b16 %v331_v8, %v330_v17  ;;  %v348_v30 = vrot.slane %v346_v23, 2  ;;  %v288_v39 = vunpack.c.l.b16 %v225_v32 }
  0x15   : > { %v395_v25 = vrot.slane %v393_v18, 3  ;;  %v247_v26 = vor.u32 %v246_v21, %v242_v16  ;;  %v249_v27 = vshll.u32 %v239_v20, 16  ;;  %v351_v31 = vrot.slane %v349_v24, 3 }
  0x16   : > { %v338_v28 = vshrl.u32 %v334_v22, 16  ;;  %v341_v29 = vshll.u32 %v334_v22, 16  ;;  %v289_v42 = vpack.c.b16 %v288_v39, %v288_v39  ;;  %v253_v43 = vshrl.u32 %v239_v20, 16 }
  0x17   : > { %v397_v33 = vsel %vm394_vm1, %v395_v25, %v396_v19  ;;  %v251_v34 = vrot.slane %v249_v27, 1  ;;  %v352_v37 = vor.u32 %v351_v31, %v348_v30 }
  0x18   : > { %606 = vmatmul.msk.bf16.vlgmr.msra.gmra.mxu3 %vm262_vm0, %v397_v33  ;;  %v340_v35 = vrot.slane %v338_v28, 2  ;;  %v343_v36 = vrot.slane %v341_v29, 3 }
  0x19   : > { %v252_v38 = vsel %vm240_vm2, %v247_v26, %v251_v34  ;;  %v255_v44 = vor.u32 %v253_v43, %v251_v34 }
  0x1a   : > { %580 = vmatmul.msk.bf16.vlgmr.msra.gmra.mxu0 %vm262_vm0, %v252_v38  ;;  %v344_v40 = vor.u32 %v343_v36, %v340_v35 }
  0x1c   : > { %v353_v41 = vsel %vm336_vm3, %v344_v40, %v352_v37 }
  0x1d   : > { %598 = vmatmul.msk.bf16.vlgmr.msra.gmra.mxu2 %vm262_vm0, %v353_v41 }
  0x20   : > { %587 = vmatmul.msk.bf16.gmra.mxu1 %vm262_vm0, %v289_v42 }
  0x28   : > { %607 = vmatmul.msk.bf16.gmra.mxu3 %vm262_vm0, %v396_v19 }
  0x2a   : > { %581 = vmatmul.msk.bf16.gmra.mxu0 %vm262_vm0, %v255_v44 }
  0x2d   : > { %599 = vmatmul.msk.bf16.gmra.mxu2 %vm262_vm0, %v352_v37 }
  0x8d   : > { %v310_v45 = vpop.f32.mrf.mxu1 }
  0x95   : > { %v312_v46 = vpop.f32.mrf.mxu1 }
  0x97   : > { %v278_v47 = vpop.f32.mrf.mxu0 }
  0x98   : > { %v311_v49 = vadd.f32 %v310_v45, %v278_v47 }
  0x9b   : > { %v419_v48 = vpop.f32.mrf.mxu3 }
  0x9d   : > { %v315_v50 = vpop.f32.mrf.mxu1 }
  0x9f   : > { %v280_v51 = vpop.f32.mrf.mxu0 }
  0xa0   : > { %v375_v52 = vpop.f32.mrf.mxu2  ;;  %v313_v59 = vadd.f32 %v312_v46, %v280_v51 }
  0xa1   : > { %v384_v53 = vadd.f32 %v375_v52, %v311_v49 }
  0xa3   : > { %v428_v55 = vadd.f32 %v419_v48, %v384_v53  ;;  %v421_v56 = vpop.f32.mrf.mxu3 }
  0xa5   : > { %v435_v57 = vadd.f32 %v642_v54, %v428_v55  ;;  %v317_v58 = vpop.f32.mrf.mxu1 }
  0xa7   : > { %vm438_vm4 = vcmp.ge.f32.partialorder %v435_v57, 0.0  ;;  %v441_v60 = vmul.f32 0.2, %v435_v57  ;;  %v283_v61 = vpop.f32.mrf.mxu0 }
  0xa8   : > { %v377_v62 = vpop.f32.mrf.mxu2  ;;  %v316_v4 = vadd.f32 %v315_v50, %v283_v61 }
  0xa9   : > { %v444_v63 = vsel %vm438_vm4, %v435_v57, %v441_v60  ;;  %v385_v0 = vadd.f32 %v377_v62, %v313_v59 }
  0xaa   : > { %v447_v1 = vpack.c.bf16 %v444_v63, %v444_v63 }
  0xab   : > { %v429_v2 = vadd.f32 %v421_v56, %v385_v0  ;;  %v424_v3 = vpop.f32.mrf.mxu3 }
  0xac   : > { %451 = vst.msk [vmem:[%s221_s6] sm:$0xf] %vm450_vm5, %v447_v1 }
  0xad   : > { %v436_v5 = vadd.f32 %v642_v54, %v429_v2 }
  0xaf   : > { %vm439_vm6 = vcmp.ge.f32.partialorder %v436_v5, 0.0  ;;  %v442_v6 = vmul.f32 0.2, %v436_v5  ;;  %v285_v7 = vpop.f32.mrf.mxu0 }
  0xb0   : > { %v380_v8 = vpop.f32.mrf.mxu2 }
  0xb1   : > { %v445_v9 = vsel %vm439_vm6, %v436_v5, %v442_v6  ;;  %v386_v10 = vadd.f32 %v380_v8, %v316_v4 }
  0xb2   : > { %v448_v11 = vpack.c.bf16 %v445_v9, %v445_v9 }
  0xb3   : > { %v430_v12 = vadd.f32 %v424_v3, %v386_v10  ;;  %v426_v13 = vpop.f32.mrf.mxu3 }
  0xb4   : > { %452 = vst.msk [vmem:[%s221_s6 + $0x4] sm:$0xf] %vm450_vm5, %v448_v11 }
  0xb5   : > { %v437_v14 = vadd.f32 %v642_v54, %v430_v12 }
  0xb7   : > { %vm440_vm7 = vcmp.ge.f32.partialorder %v437_v14, 0.0  ;;  %v443_v15 = vmul.f32 0.2, %v437_v14 }
  0xb8   : > { %v382_v16 = vpop.f32.mrf.mxu2 }
  0xb9   : > { %v446_v17 = vsel %vm440_vm7, %v437_v14, %v443_v15 }
  0xba   : > { %v449_v18 = vpack.c.bf16 %v446_v17, %v446_v17 }
  0xbc   : > { %454 = vst.msk [vmem:[%s221_s6 + $0x8] sm:$0x3] %vm453_vm8, %v449_v18 }
  0xbd PF: > { %s13_s14 = sadd.s32 1, %s665_s14   ;;  %s763_s12 = smov %s661_s13 }
  0xbe   : > { %p10_p5 = scmp.ge.s32.totalorder %s13_s14, 4   ;;  %s764_s13 = smov %s766_s15 }
  0xc0   :  { %12 = sbr.rel (!%p10_p5) target bundleno = 2 (0x2), region = 71 }

// kernel: msresnet_forward.9
= control target key start
LH: loop header
LB: loop body
LE: loop exit
PB: predicated region body
PF: predicated region fallthrough
CT: control target
= control target key end

     0   :  { %s604_s18 = smov 0   ;;  %s665_s0 = inlined_call_operand.vmem [shape: bf16[2,16,32], index: 0, kind: input, shape index: {}]   ;;  %s666_s1 = inlined_call_operand.vmem [shape: bf16[2,2,32,16], index: 1, kind: input, shape index: {}]   ;;  %s667_s2 = inlined_call_operand.vmem [shape: f32[1,16], index: 2, kind: input, shape index: {}]   ;;  %s668_s3 = inlined_call_operand.vmem [shape: bf16[16,4], index: 3, kind: input, shape index: {}]   ;;  %s669_s4 = inlined_call_operand.vmem [shape: f32[1,4], index: 4, kind: input, shape index: {}]   ;;  %s670_s5 = inlined_call_operand.vmem [shape: f32[2,6,4], index: 5, kind: output, shape index: {}]  }
   0x1 LB: > { %s483_s19 = sadd.s32 4294967295, %s572_s18   ;;  %p487_p0 = scmp.ge.s32.totalorder %s572_s18, 1  ;;  %s572_s18 = sphi %s604_s18, %s15_s18  }
   0x2   : > { %p187_p1 = scmp.lt.s32.totalorder %s572_s18, 3 }
   0x4   : > { %p188_p2 = pnand %p487_p0, %p187_p1 }
   0x5   : > { %p214_p3 = scmp.lt.s32.totalorder (!%p188_p2), %s483_s19, 1 }
   0x6   : > { %191 = sbr.rel (%p188_p2) target bundleno = 305 (0x131), region = 40 }
   0xb   : > { %v548_v0 = vld [vmem:[%s666_s1 + $0x8] sm:$0xff]  ;;  %v554_v1 = vld [vmem:[%s666_s1 + $0x38] sm:$0xff]  ;;  %v547_v4 = vld [vmem:[%s666_s1] sm:$0xff]  ;;  %s672_s19 = smov (!%p214_p3, %s483_s19), 1  ;;  %vm257_vm0 = vcmask 261120   ;;  %vm411_vm2 = vcmask 130048  }
   0xc   : > { %v550_v2 = vld [vmem:[%s666_s1 + $0x18] sm:$0xff]  ;;  %v552_v3 = vld [vmem:[%s666_s1 + $0x28] sm:$0xff]  ;;  %295 = vmatpush.bf16.msra.mxu1 %v548_v0  ;;  %382 = vmatpush.bf16.msra.mxu3 %v554_v1  ;;  %v553_v5 = vld [vmem:[%s666_s1 + $0x30] sm:$0xff]  ;;  %s546_s11 = sshll.u32 %s672_s19, 3  ;;  %vm428_vm3 = vcmask 29696  }
   0xd   : > { %267 = vmatpush.bf16.msra.mxu0 %v550_v2  ;;  %343 = vmatpush.bf16.msra.mxu2 %v552_v3  ;;  %v549_v6 = vld [vmem:[%s666_s1 + $0x10] sm:$0xff]  ;;  %v551_v7 = vld [vmem:[%s666_s1 + $0x20] sm:$0xff]  ;;  %s218_s14 = scalar_lea.vmem %s665_s0, %s546_s11  ;;  %s222_s25 = scalar_lea.vmem %s670_s5, %s546_s11 }
   0xe   : > { %v224_v8 = vld [vmem:[%s218_s14] sm:$0x7]  ;;  %v303_v9 = vld [vmem:[%s218_s14 + $0x4] sm:$0x1] }
   0xf   : > { %v351_v10 = vld [vmem:[%s218_s14] sm:$0xc]  ;;  %v312_v11 = vunpack.c.l.b16 %v303_v9  ;;  %v564_v38 = vld [vmem:[%s667_s2] ss:$0 sm:$0xff] }
  0x10   : > { %296 = vmatpush.bf16.msra.mxu1 %v547_v4  ;;  %383 = vmatpush.bf16.msra.mxu3 %v553_v5  ;;  %v358_v12 = vunpack.c.l.b16 %v351_v10  ;;  %v229_v13 = vld [vmem:[%s218_s14] sm:$0xf] }
  0x11   : > { %268 = vmatpush.bf16.msra.mxu0 %v549_v6  ;;  %344 = vmatpush.bf16.msra.mxu2 %v551_v7  ;;  %v302_v14 = vld [vmem:[%s218_s14] sm:$0xe]  ;;  %v236_v15 = vunpack.c.l.b16 %v229_v13  ;;  %v565_v47 = vld [vmem:[%s669_s4] ss:$0 sm:$0xff] }
  0x12   : > { %v311_v16 = vunpack.c.l.b16 %v302_v14  ;;  %v359_v17 = vpack.c.b16 %v312_v11, %v358_v12  ;;  %v555_v30 = vld [vmem:[%s668_s3] sm:$0xff] }
  0x13   : > { %512 = vmatmul.msk.bf16.vlgmr.msra.gmra.mxu1 %vm257_vm0, %v224_v8  ;;  %v237_v18 = vpack.c.b16 %v236_v15, %v236_v15 }
  0x14   : > { %v313_v19 = vpack.c.b16 %v312_v11, %v311_v16  ;;  %v360_v20 = vrot.slane %v359_v17, 2 }
  0x15   : > { %v239_v21 = vshrl.u32 %v237_v18, 16  ;;  %v241_v22 = vshll.u32 %v237_v18, 16  ;;  %422 = vmatpush.bf16.msrb.mxu0 %v555_v30 }
  0x16   : > { %v315_v23 = vshrl.u32 %v313_v19, 16  ;;  %v318_v24 = vshll.u32 %v313_v19, 16  ;;  %538 = vmatmul.msk.bf16.vlgmr.msra.gmra.mxu3 %vm257_vm0, %v360_v20 }
  0x17   : > { %v243_v25 = vrot.slane %v241_v22, 1 }
  0x18   : > { %v317_v26 = vrot.slane %v315_v23, 1  ;;  %v320_v27 = vrot.slane %v318_v24, 2 }
  0x19   : > { %v244_v28 = vor.u32 %v243_v25, %v239_v21 }
  0x1a   : > { %v321_v29 = vor.u32 %v320_v27, %v317_v26 }
  0x1b   : > { %503 = vmatmul.msk.bf16.vlgmr.msra.gmra.mxu0 %vm257_vm0, %v244_v28 }
  0x1c   : > { %525 = vmatmul.msk.bf16.vlgmr.msra.gmra.mxu2 %vm257_vm0, %v321_v29 }
  0x90   : > { %v298_v31 = vpop.f32.mrf.mxu1 }
  0x98   : > { %v300_v32 = vpop.f32.mrf.mxu1  ;;  %v270_v33 = vpop.f32.mrf.mxu0 }
  0x99   : > { %v385_v34 = vpop.f32.mrf.mxu3  ;;  %v299_v35 = vadd.f32 %v298_v31, %v270_v33 }
  0x9f   : > { %v346_v36 = vpop.f32.mrf.mxu2 }
  0xa0   : > { %v350_v37 = vadd.f32 %v346_v36, %v299_v35  ;;  %v272_v39 = vpop.f32.mrf.mxu0 }
  0xa1   : > { %v387_v41 = vpop.f32.mrf.mxu3 }
  0xa2   : > { %v389_v40 = vadd.f32 %v385_v34, %v350_v37 }
  0xa4   : > { %v394_v42 = vadd.f32 %v564_v38, %v389_v40 }
  0xa6   : > { %vm395_vm1 = vcmp.ge.f32.partialorder %v394_v42, 0.0  ;;  %v396_v43 = vmul.f32 0.2, %v394_v42 }
  0xa7   : > { %v348_v44 = vpop.f32.mrf.mxu2 }
  0xa8   : > { %v397_v45 = vsel %vm395_vm1, %v394_v42, %v396_v43 }
  0xa9   : > { %v398_v46 = vpack.c.bf16 %v397_v45, %v397_v45 }
  0xab   : > { %543 = vmatmul.msk.bf16.vlgmr.msrb.gmra.mxu0 %vm411_vm2, %v398_v46 }
 0x128   : > { %v424_v48 = vpop.f32.mrf.mxu0 }
 0x129   : > { %v425_v49 = vadd.f32 %v565_v47, %v424_v48 }
 0x12b   : > { %429 = vst.msk [vmem:[%s222_s25] sm:$0x3f] %vm428_vm3, %v425_v49 }
 0x130   : > { %v426_v50 = vpop.f32.mrf.mxu0 }
 0x131 PF: > { %s15_s18 = sadd.s32 1, %s572_s18  }
 0x132   : > { %p12_p4 = scmp.ge.s32.totalorder %s15_s18, 4  }
 0x134   :  { %14 = sbr.rel (!%p12_p4) target bundleno = 1 (0x1), region = 73 }

// kernel: msresnet_forward.10
= control target key start
LH: loop header
LB: loop body
LE: loop exit
PB: predicated region body
PF: predicated region fallthrough
CT: control target
= control target key end

     0   :  { %s577_s12 = smov 0   ;;  %s579_s13 = smov 0   ;;  %s633_s0 = inlined_call_operand.vmem [shape: bf16[2,16,16], index: 0, kind: input, shape index: {}]   ;;  %s634_s1 = inlined_call_operand.vmem [shape: bf16[2,2,16,8], index: 1, kind: input, shape index: {}]   ;;  %s635_s2 = inlined_call_operand.vmem [shape: f32[1,8], index: 2, kind: input, shape index: {}]   ;;  %s636_s3 = inlined_call_operand.vmem [shape: bf16[2,6,8], index: 3, kind: output, shape index: {}]  }
   0x1   :  { %s581_s14 = smov 0  }
   0x2 LB: > { %s25_s15 = sadd.s32 1, %s551_s13  ;;  %p471_p0 = scmp.ge.s32.totalorder %s555_s14, 1  ;;  %s555_s14 = sphi %s581_s14, %s13_s14   ;;  %s551_s13 = sphi %s579_s13, %s638_s13   ;;  %s547_s12 = sphi %s577_s12, %s637_s12  }
   0x3   : > { %p27_p1 = scmp.ge.s32.totalorder %s25_s15, 2  ;;  %p168_p2 = scmp.lt.s32.totalorder %s555_s14, 3 }
   0x5   : > { %s640_s15 = smov (%p27_p1, %s25_s15), 0  ;;  %p169_p3 = pnand %p471_p0, %p168_p2 }
   0x6   : > { %p201_p4 = scmp.lt.s32.totalorder (!%p169_p3), %s547_s12, 1 }
   0x7   : > { %172 = sbr.rel (%p169_p3) target bundleno = 173 (0xad), region = 32 }
   0xc   : > { %v504_v0 = vld [vmem:[%s634_s1] sm:$0xff]  ;;  %v507_v1 = vld [vmem:[%s634_s1 + $0x18] sm:$0xff]  ;;  %v505_v2 = vld [vmem:[%s634_s1 + $0x8] sm:$0xff]  ;;  %s642_s12 = smov (!%p201_p4, %s547_s12), 1  ;;  %vm244_vm0 = vcmask 130048   ;;  %vm364_vm2 = vcmask 59392  }
   0xd   : > { %v506_v3 = vld [vmem:[%s634_s1 + $0x10] sm:$0xff]  ;;  %277 = vmatpush.bf16.msra.mxu1 %v504_v0  ;;  %348 = vmatpush.bf16.msra.mxu3 %v507_v1  ;;  %s503_s24 = sshll.u32 %s642_s12, 3  ;;  %v532_v33 = vld [vmem:[%s635_s2] ss:$0 sm:$0xff]  ;;  %s474_s30 = sshll.u32 %s642_s12, 2 }
   0xe   : > { %255 = vmatpush.bf16.msra.mxu0 %v505_v2  ;;  %317 = vmatpush.bf16.msra.mxu2 %v506_v3  ;;  %s205_s27 = scalar_lea.vmem %s633_s0, %s503_s24  ;;  %s219_s6 = scalar_lea.vmem %s636_s3, %s474_s30 }
   0xf   : > { %v221_v4 = vld [vmem:[%s205_s27] sm:$0x7]  ;;  %v284_v5 = vld [vmem:[%s205_s27 + $0x4] sm:$0x1] }
  0x10   : > { %v324_v6 = vld [vmem:[%s205_s27] sm:$0xc]  ;;  %486 = vmatmul.msk.bf16.vlgmr.msra.gmra.mxu1 %vm244_vm0, %v221_v4  ;;  %v291_v7 = vunpack.c.l.b16 %v284_v5 }
  0x11   : > { %v329_v8 = vunpack.c.l.b16 %v324_v6  ;;  %v224_v9 = vld [vmem:[%s205_s27] sm:$0xf] }
  0x12   : > { %v283_v10 = vld [vmem:[%s205_s27] sm:$0xe]  ;;  %v229_v11 = vunpack.c.l.b16 %v224_v9 }
  0x13   : > { %v290_v12 = vunpack.c.l.b16 %v283_v10  ;;  %v330_v13 = vpack.c.b16 %v291_v7, %v329_v8 }
  0x14   : > { %v230_v14 = vpack.c.b16 %v229_v11, %v229_v11 }
  0x15   : > { %v292_v15 = vpack.c.b16 %v291_v7, %v290_v12  ;;  %v331_v16 = vrot.slane %v330_v13, 2 }
  0x16   : > { %v232_v17 = vshrl.u32 %v230_v14, 16  ;;  %v234_v18 = vshll.u32 %v230_v14, 16 }
  0x17   : > { %v294_v19 = vshrl.u32 %v292_v15, 16  ;;  %v297_v20 = vshll.u32 %v292_v15, 16  ;;  %500 = vmatmul.msk.bf16.vlgmr.msra.gmra.mxu3 %vm244_vm0, %v331_v16 }
  0x18   : > { %v236_v21 = vrot.slane %v234_v18, 1 }
  0x19   : > { %v296_v22 = vrot.slane %v294_v19, 1  ;;  %v299_v23 = vrot.slane %v297_v20, 2 }
  0x1a   : > { %v237_v24 = vor.u32 %v236_v21, %v232_v17 }
  0x1b   : > { %v300_v25 = vor.u32 %v299_v23, %v296_v22 }
  0x1c   : > { %481 = vmatmul.msk.bf16.vlgmr.msra.gmra.mxu0 %vm244_vm0, %v237_v24 }
  0x1d   : > { %493 = vmatmul.msk.bf16.vlgmr.msra.gmra.mxu2 %vm244_vm0, %v300_v25 }
  0x8d   : > { %v279_v26 = vpop.f32.mrf.mxu1 }
  0x95   : > { %v281_v27 = vpop.f32.mrf.mxu1 }
  0x99   : > { %v257_v28 = vpop.f32.mrf.mxu0 }
  0x9a   : > { %v350_v29 = vpop.f32.mrf.mxu3  ;;  %v280_v30 = vadd.f32 %v279_v26, %v257_v28 }
  0xa0   : > { %v319_v31 = vpop.f32.mrf.mxu2 }
  0xa1   : > { %v323_v32 = vadd.f32 %v319_v31, %v280_v30  ;;  %v259_v34 = vpop.f32.mrf.mxu0 }
  0xa2   : > { %v352_v36 = vpop.f32.mrf.mxu3 }
  0xa3   : > { %v354_v35 = vadd.f32 %v350_v29, %v323_v32 }
  0xa5   : > { %v359_v37 = vadd.f32 %v532_v33, %v354_v35 }
  0xa7   : > { %vm360_vm1 = vcmp.ge.f32.partialorder %v359_v37, 0.0  ;;  %v361_v38 = vmul.f32 0.2, %v359_v37 }
  0xa8   : > { %v321_v39 = vpop.f32.mrf.mxu2 }
  0xa9   : > { %v362_v40 = vsel %vm360_vm1, %v359_v37, %v361_v38 }
  0xaa   : > { %v363_v41 = vpack.c.bf16 %v362_v40, %v362_v40 }
  0xac   : > { %365 = vst.msk [vmem:[%s219_s6] sm:$0x7] %vm364_vm2, %v363_v41 }
  0xad PF: > { %s13_s14 = sadd.s32 1, %s555_s14   ;;  %s637_s12 = smov %s551_s13 }
  0xae   : > { %p10_p5 = scmp.ge.s32.totalorder %s13_s14, 4   ;;  %s638_s13 = smov %s640_s15 }
  0xb0   :  { %12 = sbr.rel (!%p10_p5) target bundleno = 2 (0x2), region = 71 }

// kernel: msresnet_forward.11
= control target key start
LH: loop header
LB: loop body
LE: loop exit
PB: predicated region body
PF: predicated region fallthrough
CT: control target
= control target key end

     0   :  { %s596_s18 = smov 0   ;;  %s654_s0 = inlined_call_operand.vmem [shape: bf16[2,8,32], index: 0, kind: input, shape index: {}]   ;;  %s655_s1 = inlined_call_operand.vmem [shape: bf16[2,2,32,16], index: 1, kind: input, shape index: {}]   ;;  %s656_s2 = inlined_call_operand.vmem [shape: f32[1,16], index: 2, kind: input, shape index: {}]   ;;  %s657_s3 = inlined_call_operand.vmem [shape: bf16[16,8], index: 3, kind: input, shape index: {}]   ;;  %s658_s4 = inlined_call_operand.vmem [shape: f32[1,8], index: 4, kind: input, shape index: {}]   ;;  %s659_s5 = inlined_call_operand.vmem [shape: f32[2,2,8], index: 5, kind: output, shape index: {}]  }
   0x1 LB: > { %s477_s19 = sadd.s32 4294967295, %s564_s18   ;;  %p481_p0 = scmp.ge.s32.totalorder %s564_s18, 1  ;;  %s564_s18 = sphi %s596_s18, %s15_s18  }
   0x2   : > { %p186_p1 = scmp.lt.s32.totalorder %s564_s18, 3 }
   0x4   : > { %p187_p2 = pnand %p481_p0, %p186_p1 }
   0x5   : > { %p212_p3 = scmp.lt.s32.totalorder (!%p187_p2), %s477_s19, 1 }
   0x6   : > { %190 = sbr.rel (%p187_p2) target bundleno = 302 (0x12e), region = 40 }
   0xb   : > { %v540_v0 = vld [vmem:[%s655_s1 + $0x8] sm:$0xff]  ;;  %v542_v2 = vld [vmem:[%s655_s1 + $0x18] sm:$0xff]  ;;  %v539_v4 = vld [vmem:[%s655_s1] sm:$0xff]  ;;  %s661_s19 = smov (!%p212_p3, %s477_s19), 1  ;;  %vm254_vm0 = vcmask 261120   ;;  %vm405_vm2 = vcmask 130048  }
   0xc   : > { %v544_v1 = vld [vmem:[%s655_s1 + $0x28] sm:$0xff]  ;;  %v546_v3 = vld [vmem:[%s655_s1 + $0x38] sm:$0xff]  ;;  %292 = vmatpush.bf16.msra.mxu1 %v540_v0  ;;  %v543_v5 = vld [vmem:[%s655_s1 + $0x20] sm:$0xff]  ;;  %264 = vmatpush.bf16.msra.mxu0 %v542_v2  ;;  %s482_s11 = sshll.u32 %s661_s19, 2  ;;  %s483_s21 = sshll.u32 %s661_s19, 1  ;;  %vm422_vm3 = vcmask 58368  }
   0xd   : > { %330 = vmatpush.bf16.msra.mxu2 %v544_v1  ;;  %376 = vmatpush.bf16.msra.mxu3 %v546_v3  ;;  %v541_v6 = vld [vmem:[%s655_s1 + $0x10] sm:$0xff]  ;;  %s215_s14 = scalar_lea.vmem %s654_s0, %s482_s11  ;;  %v547_v28 = vld [vmem:[%s657_s3] sm:$0xff]  ;;  %s219_s26 = scalar_lea.vmem %s659_s5, %s483_s21 }
   0xe   : > { %v545_v7 = vld [vmem:[%s655_s1 + $0x30] sm:$0xff]  ;;  %v221_v8 = vld [vmem:[%s215_s14] sm:$0x1]  ;;  %v299_v9 = vld [vmem:[%s215_s14] sm:$0x2] }
   0xf   : > { %v226_v10 = vld [vmem:[%s215_s14] sm:$0x3]  ;;  %v306_v11 = vunpack.c.l.b16 %v299_v9 }
  0x10   : > { %293 = vmatpush.bf16.msra.mxu1 %v539_v4  ;;  %265 = vmatpush.bf16.msra.mxu0 %v541_v6  ;;  %v233_v12 = vunpack.c.l.b16 %v226_v10  ;;  %v338_v13 = vld [vmem:[%s215_s14] sm:$0x6]  ;;  %v556_v35 = vld [vmem:[%s656_s2] ss:$0 sm:$0xff] }
  0x11   : > { %331 = vmatpush.bf16.msra.mxu2 %v543_v5  ;;  %377 = vmatpush.bf16.msra.mxu3 %v545_v7  ;;  %v345_v14 = vunpack.c.l.b16 %v338_v13  ;;  %v307_v15 = vpack.c.b16 %v306_v11, %v306_v11  ;;  %v557_v45 = vld [vmem:[%s658_s4] ss:$0 sm:$0xff] }
  0x12   : > { %v234_v16 = vpack.c.b16 %v233_v12, %v233_v12 }
  0x13   : > { %505 = vmatmul.msk.bf16.vlgmr.msra.gmra.mxu1 %vm254_vm0, %v221_v8  ;;  %v346_v17 = vpack.c.b16 %v345_v14, %v345_v14  ;;  %v308_v18 = vrot.slane %v307_v15, 1 }
  0x14   : > { %v236_v19 = vshrl.u32 %v234_v16, 16  ;;  %v238_v20 = vshll.u32 %v234_v16, 16  ;;  %416 = vmatpush.bf16.msrb.mxu0 %v547_v28 }
  0x15   : > { %v348_v21 = vshrl.u32 %v346_v17, 16  ;;  %v351_v22 = vshll.u32 %v346_v17, 16  ;;  %518 = vmatmul.msk.bf16.vlgmr.msra.gmra.mxu2 %vm254_vm0, %v308_v18 }
  0x16   : > { %v240_v23 = vrot.slane %v238_v20, 1 }
  0x17   : > { %v350_v24 = vrot.slane %v348_v21, 1  ;;  %v353_v25 = vrot.slane %v351_v22, 2 }
  0x18   : > { %v241_v26 = vor.u32 %v240_v23, %v236_v19 }
  0x19   : > { %v354_v27 = vor.u32 %v353_v25, %v350_v24 }
  0x1a   : > { %496 = vmatmul.msk.bf16.vlgmr.msra.gmra.mxu0 %vm254_vm0, %v241_v26 }
  0x1b   : > { %531 = vmatmul.msk.bf16.vlgmr.msra.gmra.mxu3 %vm254_vm0, %v354_v27 }
  0x90   : > { %v295_v29 = vpop.f32.mrf.mxu1 }
  0x97   : > { %v267_v30 = vpop.f32.mrf.mxu0 }
  0x98   : > { %v297_v31 = vpop.f32.mrf.mxu1  ;;  %v296_v32 = vadd.f32 %v295_v29, %v267_v30  ;;  %v333_v33 = vpop.f32.mrf.mxu2 }
  0x9a   : > { %v337_v34 = vadd.f32 %v333_v33, %v296_v32 }
  0x9e   : > { %v379_v36 = vpop.f32.mrf.mxu3 }
  0x9f   : > { %v383_v37 = vadd.f32 %v379_v36, %v337_v34  ;;  %v269_v38 = vpop.f32.mrf.mxu0 }
  0xa0   : > { %v335_v40 = vpop.f32.mrf.mxu2 }
  0xa1   : > { %v388_v39 = vadd.f32 %v556_v35, %v383_v37 }
  0xa3   : > { %vm389_vm1 = vcmp.ge.f32.partialorder %v388_v39, 0.0  ;;  %v390_v41 = vmul.f32 0.2, %v388_v39 }
  0xa5   : > { %v391_v42 = vsel %vm389_vm1, %v388_v39, %v390_v41 }
  0xa6   : > { %v392_v43 = vpack.c.bf16 %v391_v42, %v391_v42  ;;  %v381_v44 = vpop.f32.mrf.mxu3 }
  0xa8   : > { %536 = vmatmul.msk.bf16.vlgmr.msrb.gmra.mxu0 %vm405_vm2, %v392_v43 }
 0x125   : > { %v418_v46 = vpop.f32.mrf.mxu0 }
 0x126   : > { %v419_v47 = vadd.f32 %v557_v45, %v418_v46 }
 0x128   : > { %423 = vst.msk [vmem:[%s219_s26] sm:$0x3] %vm422_vm3, %v419_v47 }
 0x12d   : > { %v420_v48 = vpop.f32.mrf.mxu0 }
 0x12e PF: > { %s15_s18 = sadd.s32 1, %s564_s18  }
 0x12f   : > { %p12_p4 = scmp.ge.s32.totalorder %s15_s18, 4  }
 0x131   :  { %14 = sbr.rel (!%p12_p4) target bundleno = 1 (0x1), region = 73 }

</bundles_post_ra>
